<compile_context>
chip_gen: v7x
topology: tpu7x:2x2x1
jax: 0.10.0
libtpu: 0.0.40
codegen_flags: <defaults>
</compile_context>

<pallas_src>
import functools

import jax
import jax.numpy as jnp
from jax.experimental import pallas as pl
from jax.experimental.pallas import tpu as pltpu

IN_FEATURES = 9216
HIDDEN = 128
NUM_CLASSES = 10
PADDED_CLASSES = 128   # lane-dense output width; sliced back to 10 in the wrapper
MAX_BM = 128           # default batch tile; VMEM-safe on v5e/v6e/v7x


def net2_kernel(x_ref, w1_ref, b1_ref, w2_ref, b2_ref, out_ref):
    """One batch tile: fused fc1 -> ReLU -> fc2 -> log_softmax.

    w1 is resident in VMEM (full (9216,128) block, constant index_map), so x is
    the only streamed input. No K reduction axis / accumulator scratch needed.
    """
    # Cast the x tile to the (possibly bf16) weight dtype in VMEM; the MXU runs
    # natively in that dtype and accumulates in f32.
    x = x_ref[...].astype(w1_ref.dtype)
    h = jnp.dot(x, w1_ref[...], preferred_element_type=jnp.float32)
    h = jnp.maximum(h + b1_ref[...], 0.0)                         # (bm, 128) f32

    # fc2 against lane-padded weights: pad lanes have zero weight and a -1e30
    # bias, so exp() underflows them to exactly 0 and log_softmax is untouched.
    logits = (
        jnp.dot(h, w2_ref[...], preferred_element_type=jnp.float32)
        + b2_ref[...]
    )                                                             # (bm, 128) f32

    # Numerically stable log_softmax over the class axis.
    m = jnp.max(logits, axis=1, keepdims=True)
    shifted = logits - m
    lse = jnp.log(jnp.sum(jnp.exp(shifted), axis=1, keepdims=True))
    out_ref[...] = (shifted - lse).astype(out_ref.dtype)


def prepare_params(w1, b1, w2, b2, *, weight_dtype=jnp.bfloat16):
    """One-time parameter prep (call OUTSIDE the per-step jitted forward).

    * w1 is converted to `weight_dtype` (bf16 by default) exactly once, so the
      kernel streams half the bytes of the dominant 9216x128 weight per call.
    * fc2 weight/bias are lane-padded to 128 columns (zero weight, -1e30 bias
      in pad lanes) so the output store is a full-lane unmasked vst.
    Weights are stored (in, out): the kernel's x @ W + b equals PyTorch's
    x @ W.T + b with nn.Linear's (out, in) weight.
    """
    w1p = jnp.asarray(w1, jnp.float32).astype(weight_dtype)
    b1p = jnp.asarray(b1, jnp.float32).reshape(1, HIDDEN)
    w2p = jnp.zeros((HIDDEN, PADDED_CLASSES), jnp.float32)
    w2p = w2p.at[:, :NUM_CLASSES].set(jnp.asarray(w2, jnp.float32))
    b2p = jnp.full((1, PADDED_CLASSES), -1e30, jnp.float32)
    b2p = b2p.at[:, :NUM_CLASSES].set(
        jnp.asarray(b2, jnp.float32).reshape(1, NUM_CLASSES))
    return w1p, b1p, w2p, b2p


@functools.partial(jax.jit, static_argnames=("max_bm",))
def net2_forward(x, w1p, b1p, w2p, b2p, *, max_bm=MAX_BM):
    """Net2 forward. Params must come from prepare_params()."""
    B, K = x.shape
    assert K == IN_FEATURES

    # Batch tiling: single tile at small B, otherwise max_bm-row tiles with a
    # zero-padded final tile (padded rows give finite junk, sliced off below).
    if B <= max_bm:
        bm, Bp = B, B
    else:
        bm = max_bm
        assert bm % 8 == 0  # (8,128) sublane rule for tiled batch axis
        Bp = pl.cdiv(B, bm) * bm
    if Bp != B:
        x = jnp.pad(x, ((0, Bp - B), (0, 0)))

    x_bytes = Bp * K * jnp.dtype(x.dtype).itemsize
    w1_bytes = K * HIDDEN * jnp.dtype(w1p.dtype).itemsize   # streamed once (resident)
    cost = pl.CostEstimate(
        flops=2 * Bp * K * HIDDEN + 2 * Bp * HIDDEN * PADDED_CLASSES,
        transcendentals=Bp * PADDED_CLASSES + Bp,            # exp + log
        bytes_accessed=(
            x_bytes
            + w1_bytes
            + 4 * (HIDDEN + HIDDEN * PADDED_CLASSES + PADDED_CLASSES)  # b1, w2, b2
            + 4 * Bp * PADDED_CLASSES                                  # padded output
        ),
    )

    out_padded = pl.pallas_call(
        net2_kernel,
        out_shape=jax.ShapeDtypeStruct((Bp, PADDED_CLASSES), jnp.float32),
        grid_spec=pltpu.PrefetchScalarGridSpec(
            num_scalar_prefetch=0,
            grid=(Bp // bm,),
            in_specs=[
                pl.BlockSpec((bm, K), lambda i: (i, 0)),                   # x (streamed)
                pl.BlockSpec((K, HIDDEN), lambda i: (0, 0)),               # w1 (resident)
                pl.BlockSpec((1, HIDDEN), lambda i: (0, 0)),               # b1
                pl.BlockSpec((HIDDEN, PADDED_CLASSES), lambda i: (0, 0)),  # w2 (padded)
                pl.BlockSpec((1, PADDED_CLASSES), lambda i: (0, 0)),       # b2 (padded)
            ],
            out_specs=pl.BlockSpec((bm, PADDED_CLASSES), lambda i: (i, 0)),
        ),
        compiler_params=pltpu.CompilerParams(
            dimension_semantics=("parallel",),
            # f32-weights fallback at bm=128 needs ~19 MiB (double-buffered x
            # tiles + resident w1); raise v5e's 16 MiB default. 32 MiB is safe
            # on v5e (128 MiB), v6e (128 MiB) and v7x (64 MiB) VMEM.
            vmem_limit_bytes=32 * 1024 * 1024,
        ),
        cost_estimate=cost,
    )(x, w1p, b1p, w2p, b2p)

    return out_padded[:B, :NUM_CLASSES]


def init_params(key):
    """Deterministic init mimicking nn.Linear default: U(-1/sqrt(fan_in), +)."""
    k1, k2, k3, k4 = jax.random.split(key, 4)
    bound1 = 1.0 / jnp.sqrt(float(IN_FEATURES))
    bound2 = 1.0 / jnp.sqrt(float(HIDDEN))
    # stored as (in, out) so the kernel computes x @ W
    w1 = jax.random.uniform(k1, (IN_FEATURES, HIDDEN), jnp.float32, -bound1, bound1)
    b1 = jax.random.uniform(k2, (1, HIDDEN), jnp.float32, -bound1, bound1)
    w2 = jax.random.uniform(k3, (HIDDEN, NUM_CLASSES), jnp.float32, -bound2, bound2)
    b2 = jax.random.uniform(k4, (1, NUM_CLASSES), jnp.float32, -bound2, bound2)
    return w1, b1, w2, b2


def reference(x, w1, b1, w2, b2):
    h = jnp.maximum(x @ w1 + b1, 0.0)
    logits = h @ w2 + b2
    return jax.nn.log_softmax(logits, axis=1)


if __name__ == "__main__":
    key = jax.random.PRNGKey(0)
    kx, kp = jax.random.split(key)

    B = 8
    x = jax.random.normal(kx, (B, IN_FEATURES), jnp.float32)
    w1, b1, w2, b2 = init_params(kp)

    ref = reference(x, w1, b1, w2, b2)

    # Default path: bf16-resident w1, converted once outside the jitted forward.
    params_bf16 = prepare_params(w1, b1, w2, b2)                 # bf16 weights
    out_bf16 = jax.block_until_ready(net2_forward(x, *params_bf16))
    assert out_bf16.shape == (B, NUM_CLASSES)
    assert jnp.allclose(out_bf16, ref, atol=5e-2, rtol=5e-2), "bf16 mismatch vs reference"

    # f32 fallback path: tight tolerance vs the f32 reference.
    params_f32 = prepare_params(w1, b1, w2, b2, weight_dtype=jnp.float32)
    out_f32 = jax.block_until_ready(net2_forward(x, *params_f32))
    assert out_f32.shape == (B, NUM_CLASSES)
    assert jnp.allclose(out_f32, ref, atol=1e-4, rtol=1e-4), "f32 mismatch vs reference"

    # Ragged multi-tile batch: exercises zero-padding + the "parallel" batch grid.
    B2 = 24
    x2 = jax.random.normal(jax.random.PRNGKey(1), (B2, IN_FEATURES), jnp.float32)
    ref2 = reference(x2, w1, b1, w2, b2)
    out2 = jax.block_until_ready(net2_forward(x2, *params_bf16, max_bm=16))
    assert out2.shape == (B2, NUM_CLASSES)
    assert jnp.allclose(out2, ref2, atol=5e-2, rtol=5e-2), "ragged-batch mismatch vs reference"

    print("KERNEL_OK")
</pallas_src>

<mosaic_0001>
module attributes {stable_mosaic.version = 11 : i64} {
  func.func @net2_kernel(%arg0: i32, %arg1: memref<8x9216xf32, #tpu.memory_space<vmem>>, %arg2: memref<9216x128xbf16, #tpu.memory_space<vmem>>, %arg3: memref<1x128xf32, #tpu.memory_space<vmem>>, %arg4: memref<128x128xf32, #tpu.memory_space<vmem>>, %arg5: memref<1x128xf32, #tpu.memory_space<vmem>>, %arg6: memref<8x128xf32, #tpu.memory_space<vmem>>) attributes {dimension_semantics = [#tpu.dimension_semantics<parallel>], iteration_bounds = array<i64: 1>, scalar_prefetch = 0 : i64, scratch_operands = 0 : i64, tpu.core_type = #tpu.core_type<tc>, window_params = [{transform_indices = @transform_0, window_bounds = array<i64: 8, 9216>}, {pipeline_mode = #tpu.pipeline_mode<synchronous>, transform_indices = @transform_1, window_bounds = array<i64: 9216, 128>}, {pipeline_mode = #tpu.pipeline_mode<synchronous>, transform_indices = @transform_2, window_bounds = array<i64: 1, 128>}, {pipeline_mode = #tpu.pipeline_mode<synchronous>, transform_indices = @transform_3, window_bounds = array<i64: 128, 128>}, {pipeline_mode = #tpu.pipeline_mode<synchronous>, transform_indices = @transform_4, window_bounds = array<i64: 1, 128>}, {transform_indices = @transform_5, window_bounds = array<i64: 8, 128>}]} {
    %c0 = arith.constant 0 : index
    %c0_0 = arith.constant 0 : index
    %0 = vector.load %arg1[%c0, %c0_0] : memref<8x9216xf32, #tpu.memory_space<vmem>>, vector<8x9216xf32>
    %1 = arith.truncf %0 : vector<8x9216xf32> to vector<8x9216xbf16>
    %c0_1 = arith.constant 0 : index
    %c0_2 = arith.constant 0 : index
    %2 = vector.load %arg2[%c0_1, %c0_2] : memref<9216x128xbf16, #tpu.memory_space<vmem>>, vector<9216x128xbf16>
    %cst = arith.constant dense<0.000000e+00> : vector<8x128xf32>
    %3 = tpu.matmul %1, %2, %cst {dimension_numbers = #tpu.dot_dimension_numbers<[1], [0], [0], [1], [0, 0, 1, 1], [], []>} : vector<8x9216xbf16>, vector<9216x128xbf16>, vector<8x128xf32> -> vector<8x128xf32>
    %c0_3 = arith.constant 0 : index
    %c0_4 = arith.constant 0 : index
    %4 = vector.load %arg3[%c0_3, %c0_4] : memref<1x128xf32, #tpu.memory_space<vmem>>, vector<1x128xf32>
    %5 = vector.broadcast %4 : vector<1x128xf32> to vector<8x128xf32>
    %6 = arith.addf %3, %5 : vector<8x128xf32>
    %cst_5 = arith.constant 0.000000e+00 : f32
    %7 = vector.broadcast %cst_5 : f32 to vector<8x128xf32>
    %8 = arith.maximumf %6, %7 : vector<8x128xf32>
    %c0_6 = arith.constant 0 : index
    %c0_7 = arith.constant 0 : index
    %9 = vector.load %arg4[%c0_6, %c0_7] : memref<128x128xf32, #tpu.memory_space<vmem>>, vector<128x128xf32>
    %cst_8 = arith.constant dense<0.000000e+00> : vector<8x128xf32>
    %10 = tpu.matmul %8, %9, %cst_8 {dimension_numbers = #tpu.dot_dimension_numbers<[1], [0], [0], [1], [0, 0, 1, 1], [], []>} : vector<8x128xf32>, vector<128x128xf32>, vector<8x128xf32> -> vector<8x128xf32>
    %c0_9 = arith.constant 0 : index
    %c0_10 = arith.constant 0 : index
    %11 = vector.load %arg5[%c0_9, %c0_10] : memref<1x128xf32, #tpu.memory_space<vmem>>, vector<1x128xf32>
    %12 = vector.broadcast %11 : vector<1x128xf32> to vector<8x128xf32>
    %13 = arith.addf %10, %12 : vector<8x128xf32>
    %cst_11 = arith.constant dense<0xFF800000> : vector<8xf32>
    %14 = vector.multi_reduction <maximumf>, %13, %cst_11 [1] : vector<8x128xf32> to vector<8xf32>
    %15 = vector.shape_cast %14 : vector<8xf32> to vector<8x1xf32>
    %16 = vector.broadcast %15 : vector<8x1xf32> to vector<8x128xf32>
    %17 = arith.subf %13, %16 : vector<8x128xf32>
    %18 = math.exp %17 : vector<8x128xf32>
    %cst_12 = arith.constant dense<0.000000e+00> : vector<8xf32>
    %19 = vector.multi_reduction <add>, %18, %cst_12 [1] : vector<8x128xf32> to vector<8xf32>
    %20 = vector.shape_cast %19 : vector<8xf32> to vector<8x1xf32>
    %21 = math.log %20 : vector<8x1xf32>
    %22 = vector.broadcast %21 : vector<8x1xf32> to vector<8x128xf32>
    %23 = arith.subf %17, %22 : vector<8x128xf32>
    %c0_13 = arith.constant 0 : index
    %c0_14 = arith.constant 0 : index
    %24 = vector.load %arg6[%c0_13, %c0_14] : memref<8x128xf32, #tpu.memory_space<vmem>>, vector<8x128xf32>
    tpu.vector_store %arg6[%c0_13, %c0_14], %23 {strides = array<i32>} : memref<8x128xf32, #tpu.memory_space<vmem>>, vector<8x128xf32>,
    return
  }
  func.func @transform_0(%arg0: i32) -> (i32, i32) {
    %c0_i32 = arith.constant 0 : i32
    %c0_i32_0 = arith.constant 0 : i32
    return %arg0, %c0_i32 : i32, i32
  }
  func.func @transform_1(%arg0: i32) -> (i32, i32) {
    %c0_i32 = arith.constant 0 : i32
    %c0_i32_0 = arith.constant 0 : i32
    %c0_i32_1 = arith.constant 0 : i32
    return %c0_i32, %c0_i32_0 : i32, i32
  }
  func.func @transform_2(%arg0: i32) -> (i32, i32) {
    %c0_i32 = arith.constant 0 : i32
    %c0_i32_0 = arith.constant 0 : i32
    %c0_i32_1 = arith.constant 0 : i32
    return %c0_i32, %c0_i32_0 : i32, i32
  }
  func.func @transform_3(%arg0: i32) -> (i32, i32) {
    %c0_i32 = arith.constant 0 : i32
    %c0_i32_0 = arith.constant 0 : i32
    %c0_i32_1 = arith.constant 0 : i32
    return %c0_i32, %c0_i32_0 : i32, i32
  }
  func.func @transform_4(%arg0: i32) -> (i32, i32) {
    %c0_i32 = arith.constant 0 : i32
    %c0_i32_0 = arith.constant 0 : i32
    %c0_i32_1 = arith.constant 0 : i32
    return %c0_i32, %c0_i32_0 : i32, i32
  }
  func.func @transform_5(%arg0: i32) -> (i32, i32) {
    %c0_i32 = arith.constant 0 : i32
    %c0_i32_0 = arith.constant 0 : i32
    return %arg0, %c0_i32 : i32, i32
  }
}

</mosaic_0001>

<bundles_post_ra>
// kernel: net2_forward.1
= control target key start
LH: loop header
LB: loop body
LE: loop exit
PB: predicated region body
PF: predicated region fallthrough
CT: control target
= control target key end

     0   :  { %10 = vsyncpa [#allocation3], 0  ;;  %s8729_s0 = inlined_call_operand.hbm [shape: f32[8,9216], index: 0, kind: input, shape index: {}]   ;;  %s8730_s1 = inlined_call_operand.hbm [shape: bf16[9216,128], index: 1, kind: input, shape index: {}]   ;;  %s8731_s2 = inlined_call_operand.hbm [shape: f32[1,128], index: 2, kind: input, shape index: {}]   ;;  %s8732_s3 = inlined_call_operand.hbm [shape: f32[128,128], index: 3, kind: input, shape index: {}]   ;;  %s8733_s4 = inlined_call_operand.hbm [shape: f32[1,128], index: 4, kind: input, shape index: {}]   ;;  %s8734_s5 = inlined_call_operand.hbm [shape: f32[8,128], index: 5, kind: output, shape index: {}]  }
   0x1   :  { %11 = vsyncpa [#allocation6], 0 }
   0x2   :  { %12 = vsyncpa [#allocation9], 0 }
   0x3   :  { %13 = vsyncpa [#allocation4], 0  ;;  %s8584_s18 = smov [#allocation5]   ;;  %s8444_s22 = scalar_lea.hbm %s8730_s1, 73728 }
   0x4   :  { %s29_s19 = sshll.u32 %s8584_s18, 4  ;;  %p8445_p0 = scmp.ne.s32.totalorder %s8730_s1, %s8444_s22  ;;  %s30_s19 = int_to_ptr.vmem [resolvable:$true] %s29_s19 }
   0x5   :  { %p8448_p1 = scmp.lt.u32.totalorder %s8444_s22, %s8730_s1 }
   0x7   :  { %p8450_p2 = pnand %p8448_p1, %p8445_p0 }
   0x9   :  { %8453 = shalt.err (!%p8450_p2)
}
   0xa   :  { %s8454_s27 = scalar_lea.vmem %s30_s19, 73728  ;;  %p8459_p4 = scmp.lt.s32.totalorder %s30_s19, %s30_s19 }
   0xb   :  { %p8455_p3 = scmp.ne.s32.totalorder %s30_s19, %s8454_s27  ;;  %p8460_p5 = scmp.lt.s32.totalorder %s8454_s27, %s8454_s27 }
   0xd   :  { %p8461_p6 = por %p8460_p5, %p8459_p4 }
   0xf   :  { %p8462_p7 = pnand %p8461_p6, %p8455_p3 }
  0x11   :  { %8465 = shalt.err (!%p8462_p7)
}
  0x12   :  { %s8585_s28 = smov 64   ;;  %s8586_s29 = smov 4  }
  0x13   :  { %35 = dma.hbm_to_vmem [thread:$0]  %s8730_s1, 73728, %s30_s19, [#allocation6], %s8585_s28, %s8585_s28, %s8586_s29  }
  0x14   :  { %s8587_s7 = smov [#allocation8]   ;;  %s8466_s11 = scalar_lea.hbm %s8732_s3, 2048 }
  0x15   :  { %s51_s8 = sshll.u32 %s8587_s7, 4  ;;  %p8467_p8 = scmp.ne.s32.totalorder %s8732_s3, %s8466_s11  ;;  %s52_s8 = int_to_ptr.vmem [resolvable:$true] %s51_s8 }
  0x16   :  { %p8470_p9 = scmp.lt.u32.totalorder %s8466_s11, %s8732_s3 }
  0x18   :  { %p8472_p10 = pnand %p8470_p9, %p8467_p8 }
  0x1a   :  { %8475 = shalt.err (!%p8472_p10)
}
  0x1b   :  { %s8476_s16 = scalar_lea.vmem %s52_s8, 2048  ;;  %p8481_p12 = scmp.lt.s32.totalorder %s52_s8, %s52_s8 }
  0x1c   :  { %p8477_p11 = scmp.ne.s32.totalorder %s52_s8, %s8476_s16  ;;  %p8482_p13 = scmp.lt.s32.totalorder %s8476_s16, %s8476_s16 }
  0x1e   :  { %p8483_p0 = por %p8482_p13, %p8481_p12 }
  0x20   :  { %p8484_p1 = pnand %p8483_p0, %p8477_p11 }
  0x22   :  { %8487 = shalt.err (!%p8484_p1)
}
  0x23   :  { %s8588_s1 = smov 128   ;;  %s8589_s17 = smov 8  }
  0x24   :  { %57 = dma.hbm_to_vmem [thread:$0]  %s8732_s3, 2048, %s52_s8, [#allocation9], %s8588_s1, %s8588_s1, %s8589_s17  }
  0x25   :  { %s8590_s20 = smov [#allocation2]   ;;  %s8591_s22 = smov [#allocation7]  }
  0x26   :  { %s20_s21 = sshll.u32 %s8590_s20, 4  ;;  %s42_s23 = sshll.u32 %s8591_s22, 4  ;;  %s21_s21 = int_to_ptr.vmem [resolvable:$true] %s20_s21  ;;  %s43_s23 = int_to_ptr.vmem [resolvable:$true] %s42_s23 }
  0x27   :  { %s8488_s26 = scalar_lea.hbm %s8729_s0, 9216 }
  0x28   :  { %p8489_p2 = scmp.ne.s32.totalorder %s8729_s0, %s8488_s26  ;;  %p8492_p3 = scmp.lt.u32.totalorder %s8488_s26, %s8729_s0 }
  0x2a   :  { %p8494_p4 = pnand %p8492_p3, %p8489_p2 }
  0x2c   :  { %8497 = shalt.err (!%p8494_p4)
}
  0x2d   :  { %s8498_s3 = scalar_lea.vmem %s21_s21, 9216  ;;  %p8503_p6 = scmp.lt.s32.totalorder %s21_s21, %s21_s21 }
  0x2e   :  { %p8499_p5 = scmp.ne.s32.totalorder %s21_s21, %s8498_s3  ;;  %p8504_p7 = scmp.lt.s32.totalorder %s8498_s3, %s8498_s3 }
  0x30   :  { %p8505_p8 = por %p8504_p7, %p8503_p6 }
  0x32   :  { %p8506_p9 = pnand %p8505_p8, %p8499_p5 }
  0x34   :  { %8509 = shalt.err (!%p8506_p9)
}
  0x35   :  { %23 = dma.hbm_to_vmem [thread:$0]  %s8729_s0, 9216, %s21_s21, [#allocation3]  }
  0x36   :  { %s8510_s10 = scalar_lea.hbm %s8731_s2, 16 }
  0x37   :  { %p8511_p10 = scmp.ne.s32.totalorder %s8731_s2, %s8510_s10  ;;  %p8514_p11 = scmp.lt.u32.totalorder %s8510_s10, %s8731_s2 }
  0x39   :  { %p8516_p12 = pnand %p8514_p11, %p8511_p10 }
  0x3b   :  { %8519 = shalt.err (!%p8516_p12)
}
  0x3c   :  { %s8520_s15 = scalar_lea.vmem %s43_s23, 16  ;;  %s8524_s16 = scalar_lea.vmem %s43_s23, 32 }
  0x3d   :  { %p8521_p13 = scmp.ne.s32.totalorder %s43_s23, %s8520_s15  ;;  %p8525_p0 = scmp.lt.s32.totalorder %s43_s23, %s43_s23 }
  0x3e   :  { %p8526_p1 = scmp.lt.s32.totalorder %s8524_s16, %s8520_s15 }
  0x40   :  { %p8527_p2 = por %p8526_p1, %p8525_p0 }
  0x42   :  { %p8528_p3 = pnand %p8527_p2, %p8521_p13 }
  0x44   :  { %8531 = shalt.err (!%p8528_p3)
}
  0x45   :  { %45 = dma.hbm_to_vmem [thread:$0]  %s8731_s2, 16, %s43_s23, [#allocation6]  }
  0x46   :  { %s8592_s17 = smov [#allocation10]   ;;  %s8532_s21 = scalar_lea.hbm %s8733_s4, 16 }
  0x47   :  { %s64_s18 = sshll.u32 %s8592_s17, 4  ;;  %p8533_p4 = scmp.ne.s32.totalorder %s8733_s4, %s8532_s21  ;;  %s65_s18 = int_to_ptr.vmem [resolvable:$true] %s64_s18 }
  0x48   :  { %p8536_p5 = scmp.lt.u32.totalorder %s8532_s21, %s8733_s4 }
  0x4a   :  { %p8538_p6 = pnand %p8536_p5, %p8533_p4 }
  0x4c   :  { %8541 = shalt.err (!%p8538_p6)
}
  0x4d   :  { %s8542_s27 = scalar_lea.vmem %s65_s18, 16  ;;  %s8546_s2 = scalar_lea.vmem %s65_s18, 32 }
  0x4e   :  { %p8543_p7 = scmp.ne.s32.totalorder %s65_s18, %s8542_s27  ;;  %p8547_p8 = scmp.lt.s32.totalorder %s65_s18, %s65_s18 }
  0x4f   :  { %p8548_p9 = scmp.lt.s32.totalorder %s8546_s2, %s8542_s27 }
  0x51   :  { %p8549_p10 = por %p8548_p9, %p8547_p8 }
  0x53   :  { %p8550_p11 = pnand %p8549_p10, %p8543_p7 }
  0x55   :  { %8553 = shalt.err (!%p8550_p11)
}
  0x56   :  { %67 = dma.hbm_to_vmem [thread:$0]  %s8733_s4, 16, %s65_s18, [#allocation9]  }
  0x57   :  { %8576 = dma.done.wait [#allocation3], 9216  }
  0x58   :  { %8577 = vsyncadd [#allocation3], 4294958080 }
  0x59   :  { %8578 = dma.done.wait [#allocation6], 73744  }
  0x5a   :  { %8579 = vsyncadd [#allocation6], 4294893552 }
  0x5b   :  { %8580 = dma.done.wait [#allocation9], 2064  }
  0x5c   :  { %8581 = vsyncadd [#allocation9], 4294965232  ;;  %v7864_v0 = vld [vmem:[#allocation5 + $0x40] sm:$0xff]   ;;  %v7868_v4 = vld [vmem:[#allocation5 + $0x48] sm:$0xff]   ;;  %vm8594_vm0 = vmmov 0   ;;  %s8596_s4 = smov [#allocation11]  }
  0x5d   :  { %v7865_v1 = vld [vmem:[#allocation5 + $0xc0] sm:$0xff]   ;;  %6983 = vmatprep.subr.bf16.mxu0 %v7864_v0  ;;  %v7869_v5 = vld [vmem:[#allocation5 + $0xc8] sm:$0xff]   ;;  %v7872_v8 = vld [vmem:[#allocation5 + $0x50] sm:$0xff]   ;;  %s6394_s29 = sshll.u32 %s8596_s4, 4  ;;  %s6395_s29 = int_to_ptr.vmem [resolvable:$true] %s6394_s29 }
  0x5e   :  { %v7866_v2 = vld [vmem:[#allocation5] sm:$0xff]   ;;  %7005 = vmatprep.subr.bf16.mxu1 %v7865_v1  ;;  %v7870_v6 = vld [vmem:[#allocation5 + $0x8] sm:$0xff]   ;;  %v7873_v9 = vld [vmem:[#allocation5 + $0xd0] sm:$0xff]   ;;  %s8554_s30 = scalar_lea.vmem %s6395_s29, 128  ;;  %p8559_p13 = scmp.lt.s32.totalorder %s6395_s29, %s6395_s29 }
  0x5f   :  { %v7867_v3 = vld [vmem:[#allocation5 + $0x80] sm:$0xff]   ;;  %6984 = vmatpush3.bf16.msra.mxu0 %v7866_v2  ;;  %v7871_v7 = vld [vmem:[#allocation5 + $0x88] sm:$0xff]   ;;  %v7874_v10 = vld [vmem:[#allocation5 + $0x10] sm:$0xff]   ;;  %p8555_p12 = scmp.ne.s32.totalorder %s6395_s29, %s8554_s30  ;;  %p8560_p0 = scmp.lt.s32.totalorder %s8554_s30, %s8554_s30 }
  0x60   :  { %7006 = vmatpush3.bf16.msra.mxu1 %v7867_v3  ;;  %6985 = vmatprep.subr.bf16.mxu0 %v7868_v4  ;;  %v7875_v11 = vld [vmem:[#allocation5 + $0x90] sm:$0xff]   ;;  %v7876_v12 = vld [vmem:[#allocation5 + $0x58] sm:$0xff]   ;;  %v7880_v16 = vld [vmem:[#allocation5 + $0x60] sm:$0xff]  }
  0x61   :  { %7007 = vmatprep.subr.bf16.mxu1 %v7869_v5  ;;  %v7877_v13 = vld [vmem:[#allocation5 + $0xd8] sm:$0xff]   ;;  %v7881_v17 = vld [vmem:[#allocation5 + $0xe0] sm:$0xff]   ;;  %v7884_v20 = vld [vmem:[#allocation5 + $0x68] sm:$0xff]   ;;  %p8561_p1 = por %p8560_p0, %p8559_p13 }
  0x62   :  { %v7878_v14 = vld [vmem:[#allocation5 + $0x18] sm:$0xff]   ;;  %v7882_v18 = vld [vmem:[#allocation5 + $0x20] sm:$0xff]   ;;  %v7885_v21 = vld [vmem:[#allocation5 + $0xe8] sm:$0xff]  }
  0x63   :  { %6986 = vmatpush3.bf16.msra.mxu0 %v7870_v6  ;;  %v7879_v15 = vld [vmem:[#allocation5 + $0x98] sm:$0xff]   ;;  %v7883_v19 = vld [vmem:[#allocation5 + $0xa0] sm:$0xff]   ;;  %v7886_v22 = vld [vmem:[#allocation5 + $0x28] sm:$0xff]   ;;  %p8562_p2 = pnand %p8561_p1, %p8555_p12 }
  0x64   :  { %7008 = vmatpush3.bf16.msra.mxu1 %v7871_v7  ;;  %6987 = vmatprep.subr.bf16.mxu0 %v7872_v8  ;;  %v7887_v23 = vld [vmem:[#allocation5 + $0xa8] sm:$0xff]   ;;  %v7888_v24 = vld [vmem:[#allocation5 + $0x70] sm:$0xff]   ;;  %v7892_v28 = vld [vmem:[#allocation5 + $0x78] sm:$0xff]  }
  0x65   :  { %7009 = vmatprep.subr.bf16.mxu1 %v7873_v9  ;;  %v7889_v25 = vld [vmem:[#allocation5 + $0xf0] sm:$0xff]   ;;  %v7893_v29 = vld [vmem:[#allocation5 + $0xf8] sm:$0xff]   ;;  %v85_v32 = vld [vmem:[#allocation2 + $0x8] sm:$0xff] }
  0x66   :  { %v7890_v26 = vld [vmem:[#allocation5 + $0x30] sm:$0xff]   ;;  %v7894_v30 = vld [vmem:[#allocation5 + $0x38] sm:$0xff]   ;;  %v84_v34 = vld [vmem:[#allocation2] sm:$0xff]  ;;  %v157_v35 = vpack.c.bf16 %v85_v32, %v85_v32 }
  0x67   :  { %6988 = vmatpush3.bf16.msra.mxu0 %v7874_v10  ;;  %v7891_v27 = vld [vmem:[#allocation5 + $0xb0] sm:$0xff]   ;;  %v7895_v31 = vld [vmem:[#allocation5 + $0xb8] sm:$0xff]   ;;  %v156_v37 = vpack.c.bf16 %v84_v34, %v84_v34  ;;  %v7896_v40 = vld [vmem:[#allocation5 + $0x140] sm:$0xff]  }
  0x68   :  { %7010 = vmatpush3.bf16.msra.mxu1 %v7875_v11  ;;  %6989 = vmatprep.subr.bf16.mxu0 %v7876_v12  ;;  %v87_v33 = vld [vmem:[#allocation2 + $0x18] sm:$0xff]  ;;  %v86_v38 = vld [vmem:[#allocation2 + $0x10] sm:$0xff]  ;;  %v7897_v41 = vld [vmem:[#allocation5 + $0x1c0] sm:$0xff]  }
  0x69   :  { %7011 = vmatprep.subr.bf16.mxu1 %v7877_v13  ;;  %v159_v36 = vpack.c.bf16 %v87_v33, %v87_v33  ;;  %v158_v39 = vpack.c.bf16 %v86_v38, %v86_v38  ;;  %4875 = vmatprep.mubr.bf16.mxu0 %v157_v35  ;;  %v7898_v42 = vld [vmem:[#allocation5 + $0x100] sm:$0xff]   ;;  %v7900_v44 = vld [vmem:[#allocation5 + $0x148] sm:$0xff]   ;;  %v7904_v48 = vld [vmem:[#allocation5 + $0x150] sm:$0xff]  }
  0x6a   :  { %v7899_v43 = vld [vmem:[#allocation5 + $0x180] sm:$0xff]   ;;  %v7901_v45 = vld [vmem:[#allocation5 + $0x1c8] sm:$0xff]   ;;  %v7905_v49 = vld [vmem:[#allocation5 + $0x1d0] sm:$0xff]  }
  0x6b   :  { %6990 = vmatpush3.bf16.msra.mxu0 %v7878_v14  ;;  %4915 = vmatprep.mubr.bf16.mxu1 %v159_v36  ;;  %v7902_v46 = vld [vmem:[#allocation5 + $0x108] sm:$0xff]   ;;  %v7906_v50 = vld [vmem:[#allocation5 + $0x110] sm:$0xff]   ;;  %v7908_v52 = vld [vmem:[#allocation5 + $0x158] sm:$0xff]  }
  0x6c   :  { %7012 = vmatpush3.bf16.msra.mxu1 %v7879_v15  ;;  %6991 = vmatprep.subr.bf16.mxu0 %v7880_v16  ;;  %v7903_v47 = vld [vmem:[#allocation5 + $0x188] sm:$0xff]   ;;  %v7907_v51 = vld [vmem:[#allocation5 + $0x190] sm:$0xff]   ;;  %v7909_v53 = vld [vmem:[#allocation5 + $0x1d8] sm:$0xff]  }
  0x6d   :  { %7013 = vmatprep.subr.bf16.mxu1 %v7881_v17  ;;  %v7910_v54 = vld [vmem:[#allocation5 + $0x118] sm:$0xff]   ;;  %v7912_v56 = vld [vmem:[#allocation5 + $0x160] sm:$0xff]   ;;  %v7916_v60 = vld [vmem:[#allocation5 + $0x168] sm:$0xff]  }
  0x6e   :  { %v7911_v55 = vld [vmem:[#allocation5 + $0x198] sm:$0xff]   ;;  %v7913_v57 = vld [vmem:[#allocation5 + $0x1e0] sm:$0xff]   ;;  %v7917_v61 = vld [vmem:[#allocation5 + $0x1e8] sm:$0xff]  }
  0x6f   :  { %6992 = vmatpush3.bf16.msra.mxu0 %v7882_v18  ;;  %v7914_v58 = vld [vmem:[#allocation5 + $0x120] sm:$0xff]   ;;  %v7918_v62 = vld [vmem:[#allocation5 + $0x128] sm:$0xff]   ;;  %v7920_v0 = vld [vmem:[#allocation5 + $0x170] sm:$0xff]  }
  0x70   :  { %7014 = vmatpush3.bf16.msra.mxu1 %v7883_v19  ;;  %6993 = vmatprep.subr.bf16.mxu0 %v7884_v20  ;;  %v7915_v59 = vld [vmem:[#allocation5 + $0x1a0] sm:$0xff]   ;;  %v7919_v63 = vld [vmem:[#allocation5 + $0x1a8] sm:$0xff]   ;;  %v7921_v1 = vld [vmem:[#allocation5 + $0x1f0] sm:$0xff]  }
  0x71   :  { %7015 = vmatprep.subr.bf16.mxu1 %v7885_v21  ;;  %v7922_v2 = vld [vmem:[#allocation5 + $0x130] sm:$0xff]   ;;  %v7924_v4 = vld [vmem:[#allocation5 + $0x178] sm:$0xff]   ;;  %v89_v8 = vld [vmem:[#allocation2 + $0x28] sm:$0xff] }
  0x72   :  { %v7923_v3 = vld [vmem:[#allocation5 + $0x1b0] sm:$0xff]   ;;  %v7925_v5 = vld [vmem:[#allocation5 + $0x1f8] sm:$0xff]   ;;  %v161_v10 = vpack.c.bf16 %v89_v8, %v89_v8  ;;  %v88_v12 = vld [vmem:[#allocation2 + $0x20] sm:$0xff] }
  0x73   :  { %6994 = vmatpush3.bf16.msra.mxu0 %v7886_v22  ;;  %v7926_v6 = vld [vmem:[#allocation5 + $0x138] sm:$0xff]   ;;  %v90_v13 = vld [vmem:[#allocation2 + $0x30] sm:$0xff]  ;;  %v160_v14 = vpack.c.bf16 %v88_v12, %v88_v12  ;;  %v7928_v16 = vld [vmem:[#allocation5 + $0x240] sm:$0xff]  }
  0x74   :  { %7016 = vmatpush3.bf16.msra.mxu1 %v7887_v23  ;;  %6995 = vmatprep.subr.bf16.mxu0 %v7888_v24  ;;  %v7927_v7 = vld [vmem:[#allocation5 + $0x1b8] sm:$0xff]   ;;  %v162_v15 = vpack.c.bf16 %v90_v13, %v90_v13  ;;  %v7929_v17 = vld [vmem:[#allocation5 + $0x2c0] sm:$0xff]   ;;  %v7932_v20 = vld [vmem:[#allocation5 + $0x248] sm:$0xff]  }
  0x75   :  { %7017 = vmatprep.subr.bf16.mxu1 %v7889_v25  ;;  %v91_v9 = vld [vmem:[#allocation2 + $0x38] sm:$0xff]  ;;  %v7930_v18 = vld [vmem:[#allocation5 + $0x200] sm:$0xff]   ;;  %v7933_v21 = vld [vmem:[#allocation5 + $0x2c8] sm:$0xff]  }
  0x76   :  { %v163_v11 = vpack.c.bf16 %v91_v9, %v91_v9  ;;  %v7931_v19 = vld [vmem:[#allocation5 + $0x280] sm:$0xff]   ;;  %v7934_v22 = vld [vmem:[#allocation5 + $0x208] sm:$0xff]   ;;  %v7936_v24 = vld [vmem:[#allocation5 + $0x250] sm:$0xff]  }
  0x77   :  { %6996 = vmatpush3.bf16.msra.mxu0 %v7890_v26  ;;  %v7935_v23 = vld [vmem:[#allocation5 + $0x288] sm:$0xff]   ;;  %v7937_v25 = vld [vmem:[#allocation5 + $0x2d0] sm:$0xff]   ;;  %v7944_v32 = vld [vmem:[#allocation5 + $0x260] sm:$0xff]  }
  0x78   :  { %7018 = vmatpush3.bf16.msra.mxu1 %v7891_v27  ;;  %6997 = vmatprep.subr.bf16.mxu0 %v7892_v28  ;;  %v7938_v26 = vld [vmem:[#allocation5 + $0x210] sm:$0xff]   ;;  %v7940_v28 = vld [vmem:[#allocation5 + $0x258] sm:$0xff]   ;;  %v7945_v33 = vld [vmem:[#allocation5 + $0x2e0] sm:$0xff]  }
  0x79   :  { %7019 = vmatprep.subr.bf16.mxu1 %v7893_v29  ;;  %v7939_v27 = vld [vmem:[#allocation5 + $0x290] sm:$0xff]   ;;  %v7941_v29 = vld [vmem:[#allocation5 + $0x2d8] sm:$0xff]   ;;  %v7946_v34 = vld [vmem:[#allocation5 + $0x220] sm:$0xff]  }
  0x7a   :  { %v7947_v35 = vld [vmem:[#allocation5 + $0x2a0] sm:$0xff]   ;;  %v7948_v36 = vld [vmem:[#allocation5 + $0x268] sm:$0xff]  }
  0x7b   :  { %6998 = vmatpush3.bf16.msra.mxu0 %v7894_v30  ;;  %v7942_v30 = vld [vmem:[#allocation5 + $0x218] sm:$0xff]   ;;  %v7950_v38 = vld [vmem:[#allocation5 + $0x228] sm:$0xff]   ;;  %v7976_v8 = vld [vmem:[#allocation5 + $0x360] sm:$0xff]  }
  0x7c   :  { %7020 = vmatpush3.bf16.msra.mxu1 %v7895_v31  ;;  %7027 = vmatprep.subr.bf16.mxu0 %v7896_v40  ;;  %v7943_v31 = vld [vmem:[#allocation5 + $0x298] sm:$0xff]   ;;  %v7952_v40 = vld [vmem:[#allocation5 + $0x270] sm:$0xff]   ;;  %v7977_v9 = vld [vmem:[#allocation5 + $0x3e0] sm:$0xff]  }
  0x7d   :  { %7049 = vmatprep.subr.bf16.mxu1 %v7897_v41  ;;  %v7953_v41 = vld [vmem:[#allocation5 + $0x2f0] sm:$0xff]   ;;  %v7980_v12 = vld [vmem:[#allocation5 + $0x368] sm:$0xff]  }
  0x7e   :  { %4876 = vmatmul.mubr.bf16.vlgmr.msra.gmra.mrb[0].mxu0 %v156_v37  ;;  %v7949_v37 = vld [vmem:[#allocation5 + $0x2e8] sm:$0xff]  }
  0x7f   :  { %4916 = vmatmul.mubr.bf16.vlgmr.msra.gmra.mrb[0].mxu1 %v158_v39  ;;  %7028 = vmatpush3.bf16.msra.mxu0 %v7898_v42  ;;  %v7951_v39 = vld [vmem:[#allocation5 + $0x2a8] sm:$0xff]   ;;  %v7954_v42 = vld [vmem:[#allocation5 + $0x230] sm:$0xff]  }
  0x80   :  { %7050 = vmatpush3.bf16.msra.mxu1 %v7899_v43  ;;  %7029 = vmatprep.subr.bf16.mxu0 %v7900_v44  ;;  %v7955_v43 = vld [vmem:[#allocation5 + $0x2b0] sm:$0xff]   ;;  %v7956_v44 = vld [vmem:[#allocation5 + $0x278] sm:$0xff]   ;;  %v7981_v13 = vld [vmem:[#allocation5 + $0x3e8] sm:$0xff]  }
  0x81   :  { %7051 = vmatprep.subr.bf16.mxu1 %v7901_v45  ;;  %4955 = vmatprep.mubr.bf16.mxu0 %v161_v10  ;;  %v7957_v45 = vld [vmem:[#allocation5 + $0x2f8] sm:$0xff]   ;;  %v7978_v10 = vld [vmem:[#allocation5 + $0x320] sm:$0xff]  }
  0x82   :  { %4995 = vmatprep.mubr.bf16.mxu1 %v163_v11  ;;  %v7979_v11 = vld [vmem:[#allocation5 + $0x3a0] sm:$0xff]  }
  0x83   :  { %7030 = vmatpush3.bf16.msra.mxu0 %v7902_v46  ;;  %v7958_v46 = vld [vmem:[#allocation5 + $0x238] sm:$0xff]  }
  0x84   :  { %7052 = vmatpush3.bf16.msra.mxu1 %v7903_v47  ;;  %7031 = vmatprep.subr.bf16.mxu0 %v7904_v48  ;;  %v7959_v47 = vld [vmem:[#allocation5 + $0x2b8] sm:$0xff]   ;;  %v93_v48 = vld [vmem:[#allocation2 + $0x48] sm:$0xff] }
  0x85   :  { %7053 = vmatprep.subr.bf16.mxu1 %v7905_v49  ;;  %v165_v49 = vpack.c.bf16 %v93_v48, %v93_v48  ;;  %v8008_v48 = vld [vmem:[#allocation5 + $0x460] sm:$0xff]  }
  0x87   :  { %7032 = vmatpush3.bf16.msra.mxu0 %v7906_v50  ;;  %v95_v50 = vld [vmem:[#allocation2 + $0x58] sm:$0xff] }
  0x88   :  { %7054 = vmatpush3.bf16.msra.mxu1 %v7907_v51  ;;  %7033 = vmatprep.subr.bf16.mxu0 %v7908_v52  ;;  %v92_v51 = vld [vmem:[#allocation2 + $0x40] sm:$0xff]  ;;  %v94_v52 = vld [vmem:[#allocation2 + $0x50] sm:$0xff] }
  0x89   :  { %7055 = vmatprep.subr.bf16.mxu1 %v7909_v53  ;;  %v167_v53 = vpack.c.bf16 %v95_v50, %v95_v50  ;;  %v8010_v50 = vld [vmem:[#allocation5 + $0x420] sm:$0xff]  }
  0x8b   :  { %7034 = vmatpush3.bf16.msra.mxu0 %v7910_v54  ;;  %v164_v54 = vpack.c.bf16 %v92_v51, %v92_v51  ;;  %v8011_v51 = vld [vmem:[#allocation5 + $0x4a0] sm:$0xff]  }
  0x8c   :  { %7056 = vmatpush3.bf16.msra.mxu1 %v7911_v55  ;;  %7035 = vmatprep.subr.bf16.mxu0 %v7912_v56  ;;  %v166_v55 = vpack.c.bf16 %v94_v52, %v94_v52  ;;  %v7960_v56 = vld [vmem:[#allocation5 + $0x340] sm:$0xff]   ;;  %v8012_v52 = vld [vmem:[#allocation5 + $0x468] sm:$0xff]  }
  0x8d   :  { %7057 = vmatprep.subr.bf16.mxu1 %v7913_v57  ;;  %v7961_v57 = vld [vmem:[#allocation5 + $0x3c0] sm:$0xff]  }
  0x8f   :  { %7036 = vmatpush3.bf16.msra.mxu0 %v7914_v58  ;;  %v7962_v58 = vld [vmem:[#allocation5 + $0x300] sm:$0xff]  }
  0x90   :  { %7058 = vmatpush3.bf16.msra.mxu1 %v7915_v59  ;;  %7037 = vmatprep.subr.bf16.mxu0 %v7916_v60  ;;  %v7963_v59 = vld [vmem:[#allocation5 + $0x380] sm:$0xff]   ;;  %v7964_v60 = vld [vmem:[#allocation5 + $0x348] sm:$0xff]  }
  0x91   :  { %7059 = vmatprep.subr.bf16.mxu1 %v7917_v61  ;;  %v7965_v61 = vld [vmem:[#allocation5 + $0x3c8] sm:$0xff]  }
  0x93   :  { %7038 = vmatpush3.bf16.msra.mxu0 %v7918_v62  ;;  %v7966_v62 = vld [vmem:[#allocation5 + $0x308] sm:$0xff]  }
  0x94   :  { %7060 = vmatpush3.bf16.msra.mxu1 %v7919_v63  ;;  %7039 = vmatprep.subr.bf16.mxu0 %v7920_v0  ;;  %v7967_v63 = vld [vmem:[#allocation5 + $0x388] sm:$0xff]   ;;  %v7968_v0 = vld [vmem:[#allocation5 + $0x350] sm:$0xff]  }
  0x95   :  { %7061 = vmatprep.subr.bf16.mxu1 %v7921_v1  ;;  %v7969_v1 = vld [vmem:[#allocation5 + $0x3d0] sm:$0xff]  }
  0x97   :  { %7040 = vmatpush3.bf16.msra.mxu0 %v7922_v2  ;;  %v7970_v2 = vld [vmem:[#allocation5 + $0x310] sm:$0xff]  }
  0x98   :  { %7062 = vmatpush3.bf16.msra.mxu1 %v7923_v3  ;;  %7041 = vmatprep.subr.bf16.mxu0 %v7924_v4  ;;  %v7971_v3 = vld [vmem:[#allocation5 + $0x390] sm:$0xff]   ;;  %v7972_v4 = vld [vmem:[#allocation5 + $0x358] sm:$0xff]  }
  0x99   :  { %7063 = vmatprep.subr.bf16.mxu1 %v7925_v5  ;;  %v7973_v5 = vld [vmem:[#allocation5 + $0x3d8] sm:$0xff]  }
  0x9b   :  { %7042 = vmatpush3.bf16.msra.mxu0 %v7926_v6  ;;  %v7974_v6 = vld [vmem:[#allocation5 + $0x318] sm:$0xff]  }
  0x9c   :  { %7064 = vmatpush3.bf16.msra.mxu1 %v7927_v7  ;;  %7071 = vmatprep.subr.bf16.mxu0 %v7928_v16  ;;  %v7975_v7 = vld [vmem:[#allocation5 + $0x398] sm:$0xff]   ;;  %v7984_v16 = vld [vmem:[#allocation5 + $0x370] sm:$0xff]  }
  0x9d   :  { %7093 = vmatprep.subr.bf16.mxu1 %v7929_v17  ;;  %v7985_v17 = vld [vmem:[#allocation5 + $0x3f0] sm:$0xff]  }
  0x9e   :  { %4956 = vmatmul.mubr.bf16.vlgmr.msra.gmra.mrb[4].mxu0 %v160_v14  ;;  %v7982_v14 = vld [vmem:[#allocation5 + $0x328] sm:$0xff]  }
  0x9f   :  { %4996 = vmatmul.mubr.bf16.vlgmr.msra.gmra.mrb[4].mxu1 %v162_v15  ;;  %7072 = vmatpush3.bf16.msra.mxu0 %v7930_v18  ;;  %v7983_v15 = vld [vmem:[#allocation5 + $0x3a8] sm:$0xff]   ;;  %v7986_v18 = vld [vmem:[#allocation5 + $0x330] sm:$0xff]  }
  0xa0   :  { %7094 = vmatpush3.bf16.msra.mxu1 %v7931_v19  ;;  %7073 = vmatprep.subr.bf16.mxu0 %v7932_v20  ;;  %v7987_v19 = vld [vmem:[#allocation5 + $0x3b0] sm:$0xff]   ;;  %v7988_v20 = vld [vmem:[#allocation5 + $0x378] sm:$0xff]  }
  0xa1   :  { %7095 = vmatprep.subr.bf16.mxu1 %v7933_v21  ;;  %5035 = vmatprep.mubr.bf16.mxu0 %v165_v49  ;;  %v7989_v21 = vld [vmem:[#allocation5 + $0x3f8] sm:$0xff]   ;;  %v8009_v49 = vld [vmem:[#allocation5 + $0x4e0] sm:$0xff]  }
  0xa2   :  { %5075 = vmatprep.mubr.bf16.mxu1 %v167_v53  ;;  %v8013_v53 = vld [vmem:[#allocation5 + $0x4e8] sm:$0xff]  }
  0xa3   :  { %7074 = vmatpush3.bf16.msra.mxu0 %v7934_v22  ;;  %v7990_v22 = vld [vmem:[#allocation5 + $0x338] sm:$0xff]  }
  0xa4   :  { %7096 = vmatpush3.bf16.msra.mxu1 %v7935_v23  ;;  %7075 = vmatprep.subr.bf16.mxu0 %v7936_v24  ;;  %v7991_v23 = vld [vmem:[#allocation5 + $0x3b8] sm:$0xff]   ;;  %v97_v24 = vld [vmem:[#allocation2 + $0x68] sm:$0xff] }
  0xa5   :  { %7097 = vmatprep.subr.bf16.mxu1 %v7937_v25  ;;  %v99_v25 = vld [vmem:[#allocation2 + $0x78] sm:$0xff] }
  0xa7   :  { %7076 = vmatpush3.bf16.msra.mxu0 %v7938_v26  ;;  %v96_v26 = vld [vmem:[#allocation2 + $0x60] sm:$0xff] }
  0xa8   :  { %7098 = vmatpush3.bf16.msra.mxu1 %v7939_v27  ;;  %7077 = vmatprep.subr.bf16.mxu0 %v7940_v28  ;;  %v169_v27 = vpack.c.bf16 %v97_v24, %v97_v24  ;;  %v171_v28 = vpack.c.bf16 %v99_v25, %v99_v25  ;;  %v8040_v24 = vld [vmem:[#allocation5 + $0x560] sm:$0xff]  }
  0xa9   :  { %7099 = vmatprep.subr.bf16.mxu1 %v7941_v29  ;;  %v168_v29 = vpack.c.bf16 %v96_v26, %v96_v26  ;;  %v8041_v25 = vld [vmem:[#allocation5 + $0x5e0] sm:$0xff]  }
  0xaa   :  { %v8042_v26 = vld [vmem:[#allocation5 + $0x520] sm:$0xff]  }
  0xab   :  { %7078 = vmatpush3.bf16.msra.mxu0 %v7942_v30  ;;  %v98_v30 = vld [vmem:[#allocation2 + $0x70] sm:$0xff] }
  0xac   :  { %7100 = vmatpush3.bf16.msra.mxu1 %v7943_v31  ;;  %7079 = vmatprep.subr.bf16.mxu0 %v7944_v32  ;;  %v170_v31 = vpack.c.bf16 %v98_v30, %v98_v30  ;;  %v7992_v32 = vld [vmem:[#allocation5 + $0x440] sm:$0xff]   ;;  %v8046_v30 = vld [vmem:[#allocation5 + $0x528] sm:$0xff]  }
  0xad   :  { %7101 = vmatprep.subr.bf16.mxu1 %v7945_v33  ;;  %v7993_v33 = vld [vmem:[#allocation5 + $0x4c0] sm:$0xff]  }
  0xaf   :  { %7080 = vmatpush3.bf16.msra.mxu0 %v7946_v34  ;;  %v7994_v34 = vld [vmem:[#allocation5 + $0x400] sm:$0xff]  }
  0xb0   :  { %7102 = vmatpush3.bf16.msra.mxu1 %v7947_v35  ;;  %7081 = vmatprep.subr.bf16.mxu0 %v7948_v36  ;;  %v7995_v35 = vld [vmem:[#allocation5 + $0x480] sm:$0xff]   ;;  %v7996_v36 = vld [vmem:[#allocation5 + $0x448] sm:$0xff]  }
  0xb1   :  { %7103 = vmatprep.subr.bf16.mxu1 %v7949_v37  ;;  %v7997_v37 = vld [vmem:[#allocation5 + $0x4c8] sm:$0xff]  }
  0xb3   :  { %7082 = vmatpush3.bf16.msra.mxu0 %v7950_v38  ;;  %v7998_v38 = vld [vmem:[#allocation5 + $0x408] sm:$0xff]  }
  0xb4   :  { %7104 = vmatpush3.bf16.msra.mxu1 %v7951_v39  ;;  %7083 = vmatprep.subr.bf16.mxu0 %v7952_v40  ;;  %v7999_v39 = vld [vmem:[#allocation5 + $0x488] sm:$0xff]   ;;  %v8000_v40 = vld [vmem:[#allocation5 + $0x450] sm:$0xff]  }
  0xb5   :  { %7105 = vmatprep.subr.bf16.mxu1 %v7953_v41  ;;  %v8001_v41 = vld [vmem:[#allocation5 + $0x4d0] sm:$0xff]  }
  0xb7   :  { %7084 = vmatpush3.bf16.msra.mxu0 %v7954_v42  ;;  %v8002_v42 = vld [vmem:[#allocation5 + $0x410] sm:$0xff]  }
  0xb8   :  { %7106 = vmatpush3.bf16.msra.mxu1 %v7955_v43  ;;  %7085 = vmatprep.subr.bf16.mxu0 %v7956_v44  ;;  %v8003_v43 = vld [vmem:[#allocation5 + $0x490] sm:$0xff]   ;;  %v8004_v44 = vld [vmem:[#allocation5 + $0x458] sm:$0xff]  }
  0xb9   :  { %7107 = vmatprep.subr.bf16.mxu1 %v7957_v45  ;;  %v8005_v45 = vld [vmem:[#allocation5 + $0x4d8] sm:$0xff]  }
  0xbb   :  { %7086 = vmatpush3.bf16.msra.mxu0 %v7958_v46  ;;  %v8006_v46 = vld [vmem:[#allocation5 + $0x418] sm:$0xff]  }
  0xbc   :  { %7108 = vmatpush3.bf16.msra.mxu1 %v7959_v47  ;;  %7115 = vmatprep.subr.bf16.mxu0 %v7960_v56  ;;  %v8007_v47 = vld [vmem:[#allocation5 + $0x498] sm:$0xff]   ;;  %v8016_v56 = vld [vmem:[#allocation5 + $0x470] sm:$0xff]  }
  0xbd   :  { %7137 = vmatprep.subr.bf16.mxu1 %v7961_v57  ;;  %v8017_v57 = vld [vmem:[#allocation5 + $0x4f0] sm:$0xff]  }
  0xbe   :  { %5036 = vmatmul.mubr.bf16.vlgmr.msra.gmra.mrb[8].mxu0 %v164_v54  ;;  %v8014_v54 = vld [vmem:[#allocation5 + $0x428] sm:$0xff]  }
  0xbf   :  { %5076 = vmatmul.mubr.bf16.vlgmr.msra.gmra.mrb[8].mxu1 %v166_v55  ;;  %7116 = vmatpush3.bf16.msra.mxu0 %v7962_v58  ;;  %v8015_v55 = vld [vmem:[#allocation5 + $0x4a8] sm:$0xff]   ;;  %v8018_v58 = vld [vmem:[#allocation5 + $0x430] sm:$0xff]  }
  0xc0   :  { %7138 = vmatpush3.bf16.msra.mxu1 %v7963_v59  ;;  %7117 = vmatprep.subr.bf16.mxu0 %v7964_v60  ;;  %v8019_v59 = vld [vmem:[#allocation5 + $0x4b0] sm:$0xff]   ;;  %v8020_v60 = vld [vmem:[#allocation5 + $0x478] sm:$0xff]  }
  0xc1   :  { %7139 = vmatprep.subr.bf16.mxu1 %v7965_v61  ;;  %5115 = vmatprep.mubr.bf16.mxu0 %v169_v27  ;;  %v8021_v61 = vld [vmem:[#allocation5 + $0x4f8] sm:$0xff]   ;;  %v8043_v27 = vld [vmem:[#allocation5 + $0x5a0] sm:$0xff]  }
  0xc2   :  { %5155 = vmatprep.mubr.bf16.mxu1 %v171_v28  ;;  %v8044_v28 = vld [vmem:[#allocation5 + $0x568] sm:$0xff]  }
  0xc3   :  { %7118 = vmatpush3.bf16.msra.mxu0 %v7966_v62  ;;  %v8022_v62 = vld [vmem:[#allocation5 + $0x438] sm:$0xff]  }
  0xc4   :  { %7140 = vmatpush3.bf16.msra.mxu1 %v7967_v63  ;;  %7119 = vmatprep.subr.bf16.mxu0 %v7968_v0  ;;  %v8023_v63 = vld [vmem:[#allocation5 + $0x4b8] sm:$0xff]   ;;  %v101_v0 = vld [vmem:[#allocation2 + $0x88] sm:$0xff] }
  0xc5   :  { %7141 = vmatprep.subr.bf16.mxu1 %v7969_v1  ;;  %v103_v1 = vld [vmem:[#allocation2 + $0x98] sm:$0xff] }
  0xc7   :  { %7120 = vmatpush3.bf16.msra.mxu0 %v7970_v2  ;;  %v173_v2 = vpack.c.bf16 %v101_v0, %v101_v0  ;;  %v8072_v0 = vld [vmem:[#allocation5 + $0x660] sm:$0xff]  }
  0xc8   :  { %7142 = vmatpush3.bf16.msra.mxu1 %v7971_v3  ;;  %7121 = vmatprep.subr.bf16.mxu0 %v7972_v4  ;;  %v175_v3 = vpack.c.bf16 %v103_v1, %v103_v1  ;;  %v100_v4 = vld [vmem:[#allocation2 + $0x80] sm:$0xff] }
  0xc9   :  { %7143 = vmatprep.subr.bf16.mxu1 %v7973_v5  ;;  %v102_v5 = vld [vmem:[#allocation2 + $0x90] sm:$0xff]  ;;  %v8073_v1 = vld [vmem:[#allocation5 + $0x6e0] sm:$0xff]  }
  0xcb   :  { %7122 = vmatpush3.bf16.msra.mxu0 %v7974_v6  ;;  %v172_v6 = vpack.c.bf16 %v100_v4, %v100_v4  ;;  %v8076_v4 = vld [vmem:[#allocation5 + $0x668] sm:$0xff]  }
  0xcc   :  { %7144 = vmatpush3.bf16.msra.mxu1 %v7975_v7  ;;  %7123 = vmatprep.subr.bf16.mxu0 %v7976_v8  ;;  %v174_v7 = vpack.c.bf16 %v102_v5, %v102_v5  ;;  %v8024_v8 = vld [vmem:[#allocation5 + $0x540] sm:$0xff]   ;;  %v8077_v5 = vld [vmem:[#allocation5 + $0x6e8] sm:$0xff]  }
  0xcd   :  { %7145 = vmatprep.subr.bf16.mxu1 %v7977_v9  ;;  %v8025_v9 = vld [vmem:[#allocation5 + $0x5c0] sm:$0xff]  }
  0xcf   :  { %7124 = vmatpush3.bf16.msra.mxu0 %v7978_v10  ;;  %v8026_v10 = vld [vmem:[#allocation5 + $0x500] sm:$0xff]  }
  0xd0   :  { %7146 = vmatpush3.bf16.msra.mxu1 %v7979_v11  ;;  %7125 = vmatprep.subr.bf16.mxu0 %v7980_v12  ;;  %v8027_v11 = vld [vmem:[#allocation5 + $0x580] sm:$0xff]   ;;  %v8028_v12 = vld [vmem:[#allocation5 + $0x548] sm:$0xff]  }
  0xd1   :  { %7147 = vmatprep.subr.bf16.mxu1 %v7981_v13  ;;  %v8029_v13 = vld [vmem:[#allocation5 + $0x5c8] sm:$0xff]  }
  0xd3   :  { %7126 = vmatpush3.bf16.msra.mxu0 %v7982_v14  ;;  %v8030_v14 = vld [vmem:[#allocation5 + $0x508] sm:$0xff]  }
  0xd4   :  { %7148 = vmatpush3.bf16.msra.mxu1 %v7983_v15  ;;  %7127 = vmatprep.subr.bf16.mxu0 %v7984_v16  ;;  %v8031_v15 = vld [vmem:[#allocation5 + $0x588] sm:$0xff]   ;;  %v8032_v16 = vld [vmem:[#allocation5 + $0x550] sm:$0xff]  }
  0xd5   :  { %7149 = vmatprep.subr.bf16.mxu1 %v7985_v17  ;;  %v8033_v17 = vld [vmem:[#allocation5 + $0x5d0] sm:$0xff]  }
  0xd7   :  { %7128 = vmatpush3.bf16.msra.mxu0 %v7986_v18  ;;  %v8034_v18 = vld [vmem:[#allocation5 + $0x510] sm:$0xff]  }
  0xd8   :  { %7150 = vmatpush3.bf16.msra.mxu1 %v7987_v19  ;;  %7129 = vmatprep.subr.bf16.mxu0 %v7988_v20  ;;  %v8035_v19 = vld [vmem:[#allocation5 + $0x590] sm:$0xff]   ;;  %v8036_v20 = vld [vmem:[#allocation5 + $0x558] sm:$0xff]  }
  0xd9   :  { %7151 = vmatprep.subr.bf16.mxu1 %v7989_v21  ;;  %v8037_v21 = vld [vmem:[#allocation5 + $0x5d8] sm:$0xff]  }
  0xdb   :  { %7130 = vmatpush3.bf16.msra.mxu0 %v7990_v22  ;;  %v8038_v22 = vld [vmem:[#allocation5 + $0x518] sm:$0xff]  }
  0xdc   :  { %7152 = vmatpush3.bf16.msra.mxu1 %v7991_v23  ;;  %7159 = vmatprep.subr.bf16.mxu0 %v7992_v32  ;;  %v8039_v23 = vld [vmem:[#allocation5 + $0x598] sm:$0xff]   ;;  %v8048_v32 = vld [vmem:[#allocation5 + $0x570] sm:$0xff]  }
  0xdd   :  { %7181 = vmatprep.subr.bf16.mxu1 %v7993_v33  ;;  %v8049_v33 = vld [vmem:[#allocation5 + $0x5f0] sm:$0xff]  }
  0xde   :  { %5116 = vmatmul.mubr.bf16.vlgmr.msra.gmra.mrb[12].mxu0 %v168_v29  ;;  %v8045_v29 = vld [vmem:[#allocation5 + $0x5e8] sm:$0xff]  }
  0xdf   :  { %5156 = vmatmul.mubr.bf16.vlgmr.msra.gmra.mrb[12].mxu1 %v170_v31  ;;  %7160 = vmatpush3.bf16.msra.mxu0 %v7994_v34  ;;  %v8047_v31 = vld [vmem:[#allocation5 + $0x5a8] sm:$0xff]   ;;  %v8050_v34 = vld [vmem:[#allocation5 + $0x530] sm:$0xff]  }
  0xe0   :  { %7182 = vmatpush3.bf16.msra.mxu1 %v7995_v35  ;;  %7161 = vmatprep.subr.bf16.mxu0 %v7996_v36  ;;  %v8051_v35 = vld [vmem:[#allocation5 + $0x5b0] sm:$0xff]   ;;  %v8052_v36 = vld [vmem:[#allocation5 + $0x578] sm:$0xff]  }
  0xe1   :  { %7183 = vmatprep.subr.bf16.mxu1 %v7997_v37  ;;  %5195 = vmatprep.mubr.bf16.mxu0 %v173_v2  ;;  %v8053_v37 = vld [vmem:[#allocation5 + $0x5f8] sm:$0xff]   ;;  %v8074_v2 = vld [vmem:[#allocation5 + $0x620] sm:$0xff]  }
  0xe2   :  { %5235 = vmatprep.mubr.bf16.mxu1 %v175_v3  ;;  %v8075_v3 = vld [vmem:[#allocation5 + $0x6a0] sm:$0xff]  }
  0xe3   :  { %7162 = vmatpush3.bf16.msra.mxu0 %v7998_v38  ;;  %v8054_v38 = vld [vmem:[#allocation5 + $0x538] sm:$0xff]  }
  0xe4   :  { %7184 = vmatpush3.bf16.msra.mxu1 %v7999_v39  ;;  %7163 = vmatprep.subr.bf16.mxu0 %v8000_v40  ;;  %v8055_v39 = vld [vmem:[#allocation5 + $0x5b8] sm:$0xff]   ;;  %v105_v40 = vld [vmem:[#allocation2 + $0xa8] sm:$0xff] }
  0xe5   :  { %7185 = vmatprep.subr.bf16.mxu1 %v8001_v41  ;;  %v177_v41 = vpack.c.bf16 %v105_v40, %v105_v40 }
  0xe7   :  { %7164 = vmatpush3.bf16.msra.mxu0 %v8002_v42  ;;  %v107_v42 = vld [vmem:[#allocation2 + $0xb8] sm:$0xff] }
  0xe8   :  { %7186 = vmatpush3.bf16.msra.mxu1 %v8003_v43  ;;  %7165 = vmatprep.subr.bf16.mxu0 %v8004_v44  ;;  %v104_v43 = vld [vmem:[#allocation2 + $0xa0] sm:$0xff]  ;;  %v106_v44 = vld [vmem:[#allocation2 + $0xb0] sm:$0xff] }
  0xe9   :  { %7187 = vmatprep.subr.bf16.mxu1 %v8005_v45  ;;  %v179_v45 = vpack.c.bf16 %v107_v42, %v107_v42 }
  0xeb   :  { %7166 = vmatpush3.bf16.msra.mxu0 %v8006_v46  ;;  %v176_v46 = vpack.c.bf16 %v104_v43, %v104_v43  ;;  %v8104_v43 = vld [vmem:[#allocation5 + $0x760] sm:$0xff]  }
  0xec   :  { %7188 = vmatpush3.bf16.msra.mxu1 %v8007_v47  ;;  %7167 = vmatprep.subr.bf16.mxu0 %v8008_v48  ;;  %v178_v47 = vpack.c.bf16 %v106_v44, %v106_v44  ;;  %v8056_v48 = vld [vmem:[#allocation5 + $0x640] sm:$0xff]  }
  0xed   :  { %7189 = vmatprep.subr.bf16.mxu1 %v8009_v49  ;;  %v8057_v49 = vld [vmem:[#allocation5 + $0x6c0] sm:$0xff]  }
  0xef   :  { %7168 = vmatpush3.bf16.msra.mxu0 %v8010_v50  ;;  %v8058_v50 = vld [vmem:[#allocation5 + $0x600] sm:$0xff]  }
  0xf0   :  { %7190 = vmatpush3.bf16.msra.mxu1 %v8011_v51  ;;  %7169 = vmatprep.subr.bf16.mxu0 %v8012_v52  ;;  %v8059_v51 = vld [vmem:[#allocation5 + $0x680] sm:$0xff]   ;;  %v8060_v52 = vld [vmem:[#allocation5 + $0x648] sm:$0xff]  }
  0xf1   :  { %7191 = vmatprep.subr.bf16.mxu1 %v8013_v53  ;;  %v8061_v53 = vld [vmem:[#allocation5 + $0x6c8] sm:$0xff]  }
  0xf3   :  { %7170 = vmatpush3.bf16.msra.mxu0 %v8014_v54  ;;  %v8062_v54 = vld [vmem:[#allocation5 + $0x608] sm:$0xff]  }
  0xf4   :  { %7192 = vmatpush3.bf16.msra.mxu1 %v8015_v55  ;;  %7171 = vmatprep.subr.bf16.mxu0 %v8016_v56  ;;  %v8063_v55 = vld [vmem:[#allocation5 + $0x688] sm:$0xff]   ;;  %v8064_v56 = vld [vmem:[#allocation5 + $0x650] sm:$0xff]  }
  0xf5   :  { %7193 = vmatprep.subr.bf16.mxu1 %v8017_v57  ;;  %v8065_v57 = vld [vmem:[#allocation5 + $0x6d0] sm:$0xff]  }
  0xf7   :  { %7172 = vmatpush3.bf16.msra.mxu0 %v8018_v58  ;;  %v8066_v58 = vld [vmem:[#allocation5 + $0x610] sm:$0xff]  }
  0xf8   :  { %7194 = vmatpush3.bf16.msra.mxu1 %v8019_v59  ;;  %7173 = vmatprep.subr.bf16.mxu0 %v8020_v60  ;;  %v8067_v59 = vld [vmem:[#allocation5 + $0x690] sm:$0xff]   ;;  %v8068_v60 = vld [vmem:[#allocation5 + $0x658] sm:$0xff]  }
  0xf9   :  { %7195 = vmatprep.subr.bf16.mxu1 %v8021_v61  ;;  %v8069_v61 = vld [vmem:[#allocation5 + $0x6d8] sm:$0xff]  }
  0xfb   :  { %7174 = vmatpush3.bf16.msra.mxu0 %v8022_v62  ;;  %v8070_v62 = vld [vmem:[#allocation5 + $0x618] sm:$0xff]  }
  0xfc   :  { %7196 = vmatpush3.bf16.msra.mxu1 %v8023_v63  ;;  %7203 = vmatprep.subr.bf16.mxu0 %v8024_v8  ;;  %v8071_v63 = vld [vmem:[#allocation5 + $0x698] sm:$0xff]   ;;  %v8080_v8 = vld [vmem:[#allocation5 + $0x670] sm:$0xff]  }
  0xfd   :  { %7225 = vmatprep.subr.bf16.mxu1 %v8025_v9  ;;  %v8081_v9 = vld [vmem:[#allocation5 + $0x6f0] sm:$0xff]  }
  0xfe   :  { %5196 = vmatmul.mubr.bf16.vlgmr.msra.gmra.mrb[16].mxu0 %v172_v6  ;;  %v8078_v6 = vld [vmem:[#allocation5 + $0x628] sm:$0xff]  }
  0xff   :  { %5236 = vmatmul.mubr.bf16.vlgmr.msra.gmra.mrb[16].mxu1 %v174_v7  ;;  %7204 = vmatpush3.bf16.msra.mxu0 %v8026_v10  ;;  %v8079_v7 = vld [vmem:[#allocation5 + $0x6a8] sm:$0xff]   ;;  %v8082_v10 = vld [vmem:[#allocation5 + $0x630] sm:$0xff]  }
 0x100   :  { %7226 = vmatpush3.bf16.msra.mxu1 %v8027_v11  ;;  %7205 = vmatprep.subr.bf16.mxu0 %v8028_v12  ;;  %v8083_v11 = vld [vmem:[#allocation5 + $0x6b0] sm:$0xff]   ;;  %v8084_v12 = vld [vmem:[#allocation5 + $0x678] sm:$0xff]  }
 0x101   :  { %7227 = vmatprep.subr.bf16.mxu1 %v8029_v13  ;;  %5275 = vmatprep.mubr.bf16.mxu0 %v177_v41  ;;  %v8085_v13 = vld [vmem:[#allocation5 + $0x6f8] sm:$0xff]  }
 0x102   :  { %5315 = vmatprep.mubr.bf16.mxu1 %v179_v45  ;;  %v8103_v41 = vld [vmem:[#allocation5 + $0x798] sm:$0xff]  }
 0x103   :  { %7206 = vmatpush3.bf16.msra.mxu0 %v8030_v14  ;;  %v8086_v14 = vld [vmem:[#allocation5 + $0x638] sm:$0xff]  }
 0x104   :  { %7228 = vmatpush3.bf16.msra.mxu1 %v8031_v15  ;;  %7207 = vmatprep.subr.bf16.mxu0 %v8032_v16  ;;  %v8087_v15 = vld [vmem:[#allocation5 + $0x6b8] sm:$0xff]   ;;  %v109_v16 = vld [vmem:[#allocation2 + $0xc8] sm:$0xff] }
 0x105   :  { %7229 = vmatprep.subr.bf16.mxu1 %v8033_v17  ;;  %v111_v17 = vld [vmem:[#allocation2 + $0xd8] sm:$0xff] }
 0x107   :  { %7208 = vmatpush3.bf16.msra.mxu0 %v8034_v18  ;;  %v108_v18 = vld [vmem:[#allocation2 + $0xc0] sm:$0xff] }
 0x108   :  { %7230 = vmatpush3.bf16.msra.mxu1 %v8035_v19  ;;  %7209 = vmatprep.subr.bf16.mxu0 %v8036_v20  ;;  %v181_v19 = vpack.c.bf16 %v109_v16, %v109_v16  ;;  %v183_v20 = vpack.c.bf16 %v111_v17, %v111_v17  ;;  %v8123_v16 = vld [vmem:[#allocation5 + $0x880] sm:$0xff]   ;;  %v8124_v17 = vld [vmem:[#allocation5 + $0x848] sm:$0xff]  }
 0x109   :  { %7231 = vmatprep.subr.bf16.mxu1 %v8037_v21  ;;  %v180_v21 = vpack.c.bf16 %v108_v18, %v108_v18  ;;  %v8125_v18 = vld [vmem:[#allocation5 + $0x8c8] sm:$0xff]  }
 0x10b   :  { %7210 = vmatpush3.bf16.msra.mxu0 %v8038_v22  ;;  %v110_v22 = vld [vmem:[#allocation2 + $0xd0] sm:$0xff] }
 0x10c   :  { %7232 = vmatpush3.bf16.msra.mxu1 %v8039_v23  ;;  %7211 = vmatprep.subr.bf16.mxu0 %v8040_v24  ;;  %v182_v23 = vpack.c.bf16 %v110_v22, %v110_v22  ;;  %v8088_v24 = vld [vmem:[#allocation5 + $0x740] sm:$0xff]   ;;  %v8129_v22 = vld [vmem:[#allocation5 + $0x8d0] sm:$0xff]  }
 0x10d   :  { %7233 = vmatprep.subr.bf16.mxu1 %v8041_v25  ;;  %v8089_v25 = vld [vmem:[#allocation5 + $0x7c0] sm:$0xff]  }
 0x10f   :  { %7212 = vmatpush3.bf16.msra.mxu0 %v8042_v26  ;;  %v8090_v26 = vld [vmem:[#allocation5 + $0x700] sm:$0xff]  }
 0x110   :  { %7234 = vmatpush3.bf16.msra.mxu1 %v8043_v27  ;;  %7213 = vmatprep.subr.bf16.mxu0 %v8044_v28  ;;  %v8091_v27 = vld [vmem:[#allocation5 + $0x780] sm:$0xff]   ;;  %v8092_v28 = vld [vmem:[#allocation5 + $0x748] sm:$0xff]  }
 0x111   :  { %7235 = vmatprep.subr.bf16.mxu1 %v8045_v29  ;;  %v8093_v29 = vld [vmem:[#allocation5 + $0x7c8] sm:$0xff]  }
 0x113   :  { %7214 = vmatpush3.bf16.msra.mxu0 %v8046_v30  ;;  %v8094_v30 = vld [vmem:[#allocation5 + $0x708] sm:$0xff]  }
 0x114   :  { %7236 = vmatpush3.bf16.msra.mxu1 %v8047_v31  ;;  %7215 = vmatprep.subr.bf16.mxu0 %v8048_v32  ;;  %v8095_v31 = vld [vmem:[#allocation5 + $0x788] sm:$0xff]   ;;  %v8096_v32 = vld [vmem:[#allocation5 + $0x750] sm:$0xff]  }
 0x115   :  { %7237 = vmatprep.subr.bf16.mxu1 %v8049_v33  ;;  %v8097_v33 = vld [vmem:[#allocation5 + $0x7d0] sm:$0xff]  }
 0x117   :  { %7216 = vmatpush3.bf16.msra.mxu0 %v8050_v34  ;;  %v8098_v34 = vld [vmem:[#allocation5 + $0x710] sm:$0xff]  }
 0x118   :  { %7238 = vmatpush3.bf16.msra.mxu1 %v8051_v35  ;;  %7217 = vmatprep.subr.bf16.mxu0 %v8052_v36  ;;  %v8099_v35 = vld [vmem:[#allocation5 + $0x790] sm:$0xff]   ;;  %v8100_v36 = vld [vmem:[#allocation5 + $0x758] sm:$0xff]  }
 0x119   :  { %7239 = vmatprep.subr.bf16.mxu1 %v8053_v37  ;;  %v8101_v37 = vld [vmem:[#allocation5 + $0x7d8] sm:$0xff]  }
 0x11b   :  { %7218 = vmatpush3.bf16.msra.mxu0 %v8054_v38 }
 0x11c   :  { %7240 = vmatpush3.bf16.msra.mxu1 %v8055_v39  ;;  %7247 = vmatprep.subr.bf16.mxu0 %v8056_v48  ;;  %v8102_v39 = vld [vmem:[#allocation5 + $0x718] sm:$0xff]  }
 0x11d   :  { %7269 = vmatprep.subr.bf16.mxu1 %v8057_v49  ;;  %v8106_v49 = vld [vmem:[#allocation5 + $0x720] sm:$0xff]  }
 0x11e   :  { %5276 = vmatmul.mubr.bf16.vlgmr.msra.gmra.mrb[20].mxu0 %v176_v46  ;;  %v8105_v46 = vld [vmem:[#allocation5 + $0x7e0] sm:$0xff]  }
 0x11f   :  { %5316 = vmatmul.mubr.bf16.vlgmr.msra.gmra.mrb[20].mxu1 %v178_v47  ;;  %7248 = vmatpush3.bf16.msra.mxu0 %v8058_v50 }
 0x120   :  { %7270 = vmatpush3.bf16.msra.mxu1 %v8059_v51  ;;  %7249 = vmatprep.subr.bf16.mxu0 %v8060_v52  ;;  %v8107_v51 = vld [vmem:[#allocation5 + $0x7a0] sm:$0xff]  }
 0x121   :  { %7271 = vmatprep.subr.bf16.mxu1 %v8061_v53  ;;  %5355 = vmatprep.mubr.bf16.mxu0 %v181_v19  ;;  %v6405_v52 = vld [vmem:[#allocation7] ss:$0 sm:$0xff]  ;;  %v8126_v19 = vld [vmem:[#allocation5 + $0x808] sm:$0xff]  }
 0x122   :  { %5395 = vmatprep.mubr.bf16.mxu1 %v183_v20  ;;  %v8127_v20 = vld [vmem:[#allocation5 + $0x888] sm:$0xff]  }
 0x123   :  { %7250 = vmatpush3.bf16.msra.mxu0 %v8062_v54 }
 0x124   :  { %7272 = vmatpush3.bf16.msra.mxu1 %v8063_v55  ;;  %7251 = vmatprep.subr.bf16.mxu0 %v8064_v56  ;;  %v8108_v55 = vld [vmem:[#allocation5 + $0x768] sm:$0xff]  }
 0x125   :  { %7273 = vmatprep.subr.bf16.mxu1 %v8065_v57  ;;  %v8109_v57 = vld [vmem:[#allocation5 + $0x7e8] sm:$0xff]  }
 0x127   :  { %7252 = vmatpush3.bf16.msra.mxu0 %v8066_v58 }
 0x128   :  { %7274 = vmatpush3.bf16.msra.mxu1 %v8067_v59  ;;  %7253 = vmatprep.subr.bf16.mxu0 %v8068_v60  ;;  %v8110_v59 = vld [vmem:[#allocation5 + $0x728] sm:$0xff]  }
 0x129   :  { %7275 = vmatprep.subr.bf16.mxu1 %v8069_v61  ;;  %v8111_v60 = vld [vmem:[#allocation5 + $0x7a8] sm:$0xff]   ;;  %v8112_v61 = vld [vmem:[#allocation5 + $0x770] sm:$0xff]  }
 0x12b   :  { %7254 = vmatpush3.bf16.msra.mxu0 %v8070_v62  ;;  %v8113_v62 = vld [vmem:[#allocation5 + $0x7f0] sm:$0xff]  }
 0x12c   :  { %7276 = vmatpush3.bf16.msra.mxu1 %v8071_v63  ;;  %7255 = vmatprep.subr.bf16.mxu0 %v8072_v0  ;;  %v8114_v63 = vld [vmem:[#allocation5 + $0x730] sm:$0xff]  }
 0x12d   :  { %7277 = vmatprep.subr.bf16.mxu1 %v8073_v1  ;;  %v8115_v0 = vld [vmem:[#allocation5 + $0x7b0] sm:$0xff]   ;;  %v8116_v1 = vld [vmem:[#allocation5 + $0x778] sm:$0xff]  }
 0x12f   :  { %7256 = vmatpush3.bf16.msra.mxu0 %v8074_v2  ;;  %v8117_v2 = vld [vmem:[#allocation5 + $0x7f8] sm:$0xff]  }
 0x130   :  { %7278 = vmatpush3.bf16.msra.mxu1 %v8075_v3  ;;  %7257 = vmatprep.subr.bf16.mxu0 %v8076_v4  ;;  %v8118_v3 = vld [vmem:[#allocation5 + $0x738] sm:$0xff]  }
 0x131   :  { %7279 = vmatprep.subr.bf16.mxu1 %v8077_v5  ;;  %v8119_v4 = vld [vmem:[#allocation5 + $0x7b8] sm:$0xff]   ;;  %v113_v5 = vld [vmem:[#allocation2 + $0xe8] sm:$0xff] }
 0x133   :  { %7258 = vmatpush3.bf16.msra.mxu0 %v8078_v6  ;;  %v185_v6 = vpack.c.bf16 %v113_v5, %v113_v5  ;;  %v8156_v5 = vld [vmem:[#allocation5 + $0x948] sm:$0xff]  }
 0x134   :  { %7280 = vmatpush3.bf16.msra.mxu1 %v8079_v7  ;;  %7259 = vmatprep.subr.bf16.mxu0 %v8080_v8  ;;  %v115_v7 = vld [vmem:[#allocation2 + $0xf8] sm:$0xff]  ;;  %v112_v8 = vld [vmem:[#allocation2 + $0xe0] sm:$0xff] }
 0x135   :  { %7281 = vmatprep.subr.bf16.mxu1 %v8081_v9  ;;  %v114_v9 = vld [vmem:[#allocation2 + $0xf0] sm:$0xff] }
 0x137   :  { %7260 = vmatpush3.bf16.msra.mxu0 %v8082_v10  ;;  %v187_v10 = vpack.c.bf16 %v115_v7, %v115_v7  ;;  %v8158_v7 = vld [vmem:[#allocation5 + $0x908] sm:$0xff]  }
 0x138   :  { %7282 = vmatpush3.bf16.msra.mxu1 %v8083_v11  ;;  %7261 = vmatprep.subr.bf16.mxu0 %v8084_v12  ;;  %v184_v11 = vpack.c.bf16 %v112_v8, %v112_v8  ;;  %v186_v12 = vpack.c.bf16 %v114_v9, %v114_v9  ;;  %v8159_v8 = vld [vmem:[#allocation5 + $0x988] sm:$0xff]   ;;  %v8160_v9 = vld [vmem:[#allocation5 + $0x950] sm:$0xff]  }
 0x139   :  { %7283 = vmatprep.subr.bf16.mxu1 %v8085_v13  ;;  %v8120_v13 = vld [vmem:[#allocation5 + $0x840] sm:$0xff]  }
 0x13b   :  { %7262 = vmatpush3.bf16.msra.mxu0 %v8086_v14  ;;  %v8121_v14 = vld [vmem:[#allocation5 + $0x8c0] sm:$0xff]  }
 0x13c   :  { %7284 = vmatpush3.bf16.msra.mxu1 %v8087_v15  ;;  %7291 = vmatprep.subr.bf16.mxu0 %v8088_v24  ;;  %v8122_v15 = vld [vmem:[#allocation5 + $0x800] sm:$0xff]   ;;  %v8131_v24 = vld [vmem:[#allocation5 + $0x890] sm:$0xff]  }
 0x13d   :  { %7313 = vmatprep.subr.bf16.mxu1 %v8089_v25  ;;  %v8132_v25 = vld [vmem:[#allocation5 + $0x858] sm:$0xff]  }
 0x13e   :  { %5356 = vmatmul.mubr.bf16.vlgmr.msra.gmra.mrb[24].mxu0 %v180_v21  ;;  %v8128_v21 = vld [vmem:[#allocation5 + $0x850] sm:$0xff]  }
 0x13f   :  { %5396 = vmatmul.mubr.bf16.vlgmr.msra.gmra.mrb[24].mxu1 %v182_v23  ;;  %7292 = vmatpush3.bf16.msra.mxu0 %v8090_v26  ;;  %v8130_v23 = vld [vmem:[#allocation5 + $0x810] sm:$0xff]   ;;  %v8133_v26 = vld [vmem:[#allocation5 + $0x8d8] sm:$0xff]  }
 0x140   :  { %7314 = vmatpush3.bf16.msra.mxu1 %v8091_v27  ;;  %7293 = vmatprep.subr.bf16.mxu0 %v8092_v28  ;;  %v8134_v28 = vld [vmem:[#allocation5 + $0x818] sm:$0xff]  }
 0x141   :  { %7315 = vmatprep.subr.bf16.mxu1 %v8093_v29  ;;  %5435 = vmatprep.mubr.bf16.mxu0 %v185_v6  ;;  %v8157_v6 = vld [vmem:[#allocation5 + $0x9c8] sm:$0xff]  }
 0x142   :  { %5475 = vmatprep.mubr.bf16.mxu1 %v187_v10  ;;  %v8161_v10 = vld [vmem:[#allocation5 + $0x9d0] sm:$0xff]  }
 0x143   :  { %7294 = vmatpush3.bf16.msra.mxu0 %v8094_v30  ;;  %v8135_v30 = vld [vmem:[#allocation5 + $0x898] sm:$0xff]  }
 0x144   :  { %7316 = vmatpush3.bf16.msra.mxu1 %v8095_v31  ;;  %7295 = vmatprep.subr.bf16.mxu0 %v8096_v32  ;;  %v8136_v32 = vld [vmem:[#allocation5 + $0x860] sm:$0xff]  }
 0x145   :  { %7317 = vmatprep.subr.bf16.mxu1 %v8097_v33 }
 0x147   :  { %7296 = vmatpush3.bf16.msra.mxu0 %v8098_v34 }
 0x148   :  { %7318 = vmatpush3.bf16.msra.mxu1 %v8099_v35  ;;  %7297 = vmatprep.subr.bf16.mxu0 %v8100_v36  ;;  %v8137_v35 = vld [vmem:[#allocation5 + $0x8e0] sm:$0xff]  }
 0x149   :  { %7319 = vmatprep.subr.bf16.mxu1 %v8101_v37 }
 0x14b   :  { %7298 = vmatpush3.bf16.msra.mxu0 %v8102_v39 }
 0x14c   :  { %7320 = vmatpush3.bf16.msra.mxu1 %v8103_v41  ;;  %7299 = vmatprep.subr.bf16.mxu0 %v8104_v43  ;;  %v8139_v41 = vld [vmem:[#allocation5 + $0x8a0] sm:$0xff]  }
 0x14d   :  { %7321 = vmatprep.subr.bf16.mxu1 %v8105_v46  ;;  %v8141_v46 = vld [vmem:[#allocation5 + $0x8e8] sm:$0xff]  }
 0x14f   :  { %7300 = vmatpush3.bf16.msra.mxu0 %v8106_v49  ;;  %v8144_v49 = vld [vmem:[#allocation5 + $0x870] sm:$0xff]  }
 0x150   :  { %7322 = vmatpush3.bf16.msra.mxu1 %v8107_v51  ;;  %7301 = vmatprep.subr.bf16.mxu0 %v8108_v55  ;;  %v8146_v51 = vld [vmem:[#allocation5 + $0x830] sm:$0xff]   ;;  %v8150_v55 = vld [vmem:[#allocation5 + $0x838] sm:$0xff]  }
 0x151   :  { %v6999_v38 = vpop.f32.mrb[0].mxu0  ;;  %7323 = vmatprep.subr.bf16.mxu1 %v8109_v57  ;;  %v117_v57 = vld [vmem:[#allocation2 + $0x108] sm:$0xff] }
 0x152   :  { %v7021_v40 = vpop.f32.mrb[0].mxu1  ;;  %v7000_v42 = vpop.f32.mrb[1].mxu0 }
 0x153   :  { %v7001_v44 = vadd.f32 %v7000_v42, %v6999_v38  ;;  %v7022_v45 = vpop.f32.mrb[1].mxu1  ;;  %v7002_v48 = vpop.f32.mrb[2].mxu0  ;;  %7302 = vmatpush3.bf16.msra.mxu0 %v8110_v59  ;;  %v8138_v38 = vld [vmem:[#allocation5 + $0x820] sm:$0xff]  }
 0x154   :  { %v7023_v47 = vadd.f32 %v7022_v45, %v7021_v40  ;;  %v7024_v50 = vpop.f32.mrb[2].mxu1  ;;  %v7003_v53 = vpop.f32.mrb[3].mxu0  ;;  %7324 = vmatpush3.bf16.msra.mxu1 %v8111_v60  ;;  %7303 = vmatprep.subr.bf16.mxu0 %v8112_v61  ;;  %v8143_v48 = vld [vmem:[#allocation5 + $0x8a8] sm:$0xff]   ;;  %v116_v59 = vld [vmem:[#allocation2 + $0x100] sm:$0xff]  ;;  %v189_v60 = vpack.c.bf16 %v117_v57, %v117_v57 }
 0x155   :  { %v4878_v54 = vadd.f32 %v7001_v44, %v6405_v52  ;;  %v7025_v56 = vpop.f32.mrb[3].mxu1  ;;  %7325 = vmatprep.subr.bf16.mxu1 %v8113_v62  ;;  %v8140_v44 = vld [vmem:[#allocation5 + $0x868] sm:$0xff]   ;;  %v8145_v50 = vld [vmem:[#allocation5 + $0x8f0] sm:$0xff]   ;;  %v8148_v53 = vld [vmem:[#allocation5 + $0x878] sm:$0xff]   ;;  %v188_v62 = vpack.c.bf16 %v116_v59, %v116_v59 }
 0x156   :  { %v8147_v52 = vld [vmem:[#allocation5 + $0x8b0] sm:$0xff]   ;;  %v8151_v56 = vld [vmem:[#allocation5 + $0x8b8] sm:$0xff]   ;;  %v8188_v57 = vld [vmem:[#allocation5 + $0xa48] sm:$0xff]  }
 0x157   :  { %v8687_v58 = vadd.f32 %v7023_v47, %v4878_v54  ;;  %7304 = vmatpush3.bf16.msra.mxu0 %v8114_v63  ;;  %v8142_v47 = vld [vmem:[#allocation5 + $0x828] sm:$0xff]   ;;  %v8149_v54 = vld [vmem:[#allocation5 + $0x8f8] sm:$0xff]   ;;  %v118_v63 = vld [vmem:[#allocation2 + $0x110] sm:$0xff] }
 0x158   :  { %7326 = vmatpush3.bf16.msra.mxu1 %v8115_v0  ;;  %7305 = vmatprep.subr.bf16.mxu0 %v8116_v1  ;;  %v190_v0 = vpack.c.bf16 %v118_v63, %v118_v63  ;;  %v8152_v1 = vld [vmem:[#allocation5 + $0x940] sm:$0xff]   ;;  %v8190_v59 = vld [vmem:[#allocation5 + $0xa08] sm:$0xff]   ;;  %v8194_v63 = vld [vmem:[#allocation5 + $0xa10] sm:$0xff]  }
 0x159   :  { %7327 = vmatprep.subr.bf16.mxu1 %v8117_v2  ;;  %v8153_v2 = vld [vmem:[#allocation5 + $0x9c0] sm:$0xff]  }
 0x15b   :  { %7306 = vmatpush3.bf16.msra.mxu0 %v8118_v3  ;;  %v8154_v3 = vld [vmem:[#allocation5 + $0x900] sm:$0xff]  }
 0x15c   :  { %7328 = vmatpush3.bf16.msra.mxu1 %v8119_v4  ;;  %7335 = vmatprep.subr.bf16.mxu0 %v8120_v13  ;;  %v8155_v4 = vld [vmem:[#allocation5 + $0x980] sm:$0xff]   ;;  %v8164_v13 = vld [vmem:[#allocation5 + $0x958] sm:$0xff]  }
 0x15d   :  { %7357 = vmatprep.subr.bf16.mxu1 %v8121_v14 }
 0x15e   :  { %5436 = vmatmul.mubr.bf16.vlgmr.msra.gmra.mrb[28].mxu0 %v184_v11  ;;  %v8162_v11 = vld [vmem:[#allocation5 + $0x910] sm:$0xff]  }
 0x15f   :  { %5476 = vmatmul.mubr.bf16.vlgmr.msra.gmra.mrb[28].mxu1 %v186_v12  ;;  %7336 = vmatpush3.bf16.msra.mxu0 %v8122_v15  ;;  %v8163_v12 = vld [vmem:[#allocation5 + $0x990] sm:$0xff]   ;;  %v8165_v15 = vld [vmem:[#allocation5 + $0x9d8] sm:$0xff]  }
 0x160   :  { %7358 = vmatpush3.bf16.msra.mxu1 %v8123_v16  ;;  %7337 = vmatprep.subr.bf16.mxu0 %v8124_v17  ;;  %v8166_v17 = vld [vmem:[#allocation5 + $0x918] sm:$0xff]  }
 0x161   :  { %7359 = vmatprep.subr.bf16.mxu1 %v8125_v18  ;;  %5515 = vmatprep.mubr.bf16.mxu0 %v189_v60  ;;  %v8191_v60 = vld [vmem:[#allocation5 + $0xa88] sm:$0xff]  }
 0x163   :  { %7338 = vmatpush3.bf16.msra.mxu0 %v8126_v19  ;;  %v8167_v19 = vld [vmem:[#allocation5 + $0x998] sm:$0xff]  }
 0x164   :  { %7360 = vmatpush3.bf16.msra.mxu1 %v8127_v20  ;;  %7339 = vmatprep.subr.bf16.mxu0 %v8128_v21 }
 0x165   :  { %7361 = vmatprep.subr.bf16.mxu1 %v8129_v22  ;;  %v8168_v22 = vld [vmem:[#allocation5 + $0x960] sm:$0xff]  }
 0x167   :  { %7340 = vmatpush3.bf16.msra.mxu0 %v8130_v23 }
 0x168   :  { %7362 = vmatpush3.bf16.msra.mxu1 %v8131_v24  ;;  %7341 = vmatprep.subr.bf16.mxu0 %v8132_v25  ;;  %v8169_v25 = vld [vmem:[#allocation5 + $0x9e0] sm:$0xff]  }
 0x169   :  { %7363 = vmatprep.subr.bf16.mxu1 %v8133_v26 }
 0x16b   :  { %7342 = vmatpush3.bf16.msra.mxu0 %v8134_v28  ;;  %v8170_v28 = vld [vmem:[#allocation5 + $0x920] sm:$0xff]  }
 0x16c   :  { %7364 = vmatpush3.bf16.msra.mxu1 %v8135_v30  ;;  %7343 = vmatprep.subr.bf16.mxu0 %v8136_v32  ;;  %v8171_v30 = vld [vmem:[#allocation5 + $0x9a0] sm:$0xff]  }
 0x16d   :  { %7365 = vmatprep.subr.bf16.mxu1 %v8137_v35  ;;  %v8174_v35 = vld [vmem:[#allocation5 + $0x928] sm:$0xff]  }
 0x16f   :  { %7344 = vmatpush3.bf16.msra.mxu0 %v8138_v38  ;;  %v8177_v38 = vld [vmem:[#allocation5 + $0x9f0] sm:$0xff]  }
 0x170   :  { %7366 = vmatpush3.bf16.msra.mxu1 %v8139_v41  ;;  %7345 = vmatprep.subr.bf16.mxu0 %v8140_v44  ;;  %v8180_v41 = vld [vmem:[#allocation5 + $0x978] sm:$0xff]  }
 0x171   :  { %v7043_v27 = vpop.f32.mrb[4].mxu0  ;;  %7367 = vmatprep.subr.bf16.mxu1 %v8141_v46  ;;  %v8183_v44 = vld [vmem:[#allocation5 + $0x9b8] sm:$0xff]  }
 0x172   :  { %v7065_v29 = vpop.f32.mrb[4].mxu1  ;;  %v7044_v31 = vpop.f32.mrb[5].mxu0  ;;  %v123_v46 = vld [vmem:[#allocation2 + $0x138] sm:$0xff] }
 0x173   :  { %v7045_v33 = vadd.f32 %v7044_v31, %v7043_v27  ;;  %v7066_v34 = vpop.f32.mrb[5].mxu1  ;;  %v7046_v37 = vpop.f32.mrb[6].mxu0  ;;  %7346 = vmatpush3.bf16.msra.mxu0 %v8142_v47 }
 0x174   :  { %v7067_v36 = vadd.f32 %v7066_v34, %v7065_v29  ;;  %v7068_v40 = vpop.f32.mrb[6].mxu1  ;;  %v7047_v42 = vpop.f32.mrb[7].mxu0  ;;  %7368 = vmatpush3.bf16.msra.mxu1 %v8143_v48  ;;  %7347 = vmatprep.subr.bf16.mxu0 %v8144_v49  ;;  %v8173_v34 = vld [vmem:[#allocation5 + $0x9e8] sm:$0xff]   ;;  %v8176_v37 = vld [vmem:[#allocation5 + $0x970] sm:$0xff]   ;;  %v195_v48 = vpack.c.bf16 %v123_v46, %v123_v46  ;;  %v120_v49 = vld [vmem:[#allocation2 + $0x120] sm:$0xff] }
 0x175   :  { %v4958_v39 = vadd.f32 %v7045_v33, %v8687_v58  ;;  %v7069_v45 = vpop.f32.mrb[7].mxu1  ;;  %7369 = vmatprep.subr.bf16.mxu1 %v8145_v50  ;;  %v119_v58 = vld [vmem:[#allocation2 + $0x118] sm:$0xff]  ;;  %v8172_v33 = vld [vmem:[#allocation5 + $0x968] sm:$0xff]   ;;  %v8179_v40 = vld [vmem:[#allocation5 + $0x9b0] sm:$0xff]  }
 0x176   :  { %v191_v61 = vpack.c.bf16 %v119_v58, %v119_v58  ;;  %v8181_v42 = vld [vmem:[#allocation5 + $0x9f8] sm:$0xff]   ;;  %v121_v45 = vld [vmem:[#allocation2 + $0x128] sm:$0xff]  ;;  %v122_v50 = vld [vmem:[#allocation2 + $0x130] sm:$0xff] }
 0x177   :  { %v8690_v43 = vadd.f32 %v7067_v36, %v4958_v39  ;;  %7348 = vmatpush3.bf16.msra.mxu0 %v8146_v51  ;;  %v8175_v36 = vld [vmem:[#allocation5 + $0x9a8] sm:$0xff]   ;;  %v8178_v39 = vld [vmem:[#allocation5 + $0x930] sm:$0xff]   ;;  %v193_v47 = vpack.c.bf16 %v121_v45, %v121_v45  ;;  %v192_v51 = vpack.c.bf16 %v120_v49, %v120_v49 }
 0x178   :  { %7370 = vmatpush3.bf16.msra.mxu1 %v8147_v52  ;;  %7349 = vmatprep.subr.bf16.mxu0 %v8148_v53  ;;  %v194_v52 = vpack.c.bf16 %v122_v50, %v122_v50  ;;  %v8184_v53 = vld [vmem:[#allocation5 + $0xa40] sm:$0xff]   ;;  %v8189_v58 = vld [vmem:[#allocation5 + $0xac8] sm:$0xff]   ;;  %v8224_v49 = vld [vmem:[#allocation5 + $0xb50] sm:$0xff]  }
 0x179   :  { %7371 = vmatprep.subr.bf16.mxu1 %v8149_v54  ;;  %5555 = vmatprep.mubr.bf16.mxu1 %v191_v61  ;;  %v8185_v54 = vld [vmem:[#allocation5 + $0xac0] sm:$0xff]   ;;  %v8192_v61 = vld [vmem:[#allocation5 + $0xa50] sm:$0xff]   ;;  %v8220_v45 = vld [vmem:[#allocation5 + $0xb48] sm:$0xff]  }
 0x17a   :  { %v8221_v46 = vld [vmem:[#allocation5 + $0xbc8] sm:$0xff]   ;;  %v8225_v50 = vld [vmem:[#allocation5 + $0xbd0] sm:$0xff]  }
 0x17b   :  { %7350 = vmatpush3.bf16.msra.mxu0 %v8150_v55  ;;  %v8186_v55 = vld [vmem:[#allocation5 + $0xa00] sm:$0xff]  }
 0x17c   :  { %7372 = vmatpush3.bf16.msra.mxu1 %v8151_v56  ;;  %7379 = vmatprep.subr.bf16.mxu0 %v8152_v1  ;;  %v8187_v56 = vld [vmem:[#allocation5 + $0xa80] sm:$0xff]   ;;  %v8196_v1 = vld [vmem:[#allocation5 + $0xa58] sm:$0xff]  }
 0x17d   :  { %7401 = vmatprep.subr.bf16.mxu1 %v8153_v2  ;;  %v8197_v2 = vld [vmem:[#allocation5 + $0xad8] sm:$0xff]  }
 0x17e   :  { %5516 = vmatmul.mubr.bf16.vlgmr.msra.gmra.mrb[32].mxu0 %v188_v62  ;;  %v8193_v62 = vld [vmem:[#allocation5 + $0xad0] sm:$0xff]  }
 0x17f   :  { %5556 = vmatmul.mubr.bf16.vlgmr.msra.gmra.mrb[32].mxu1 %v190_v0  ;;  %7380 = vmatpush3.bf16.msra.mxu0 %v8154_v3  ;;  %v8195_v0 = vld [vmem:[#allocation5 + $0xa90] sm:$0xff]  }
 0x180   :  { %7402 = vmatpush3.bf16.msra.mxu1 %v8155_v4  ;;  %7381 = vmatprep.subr.bf16.mxu0 %v8156_v5  ;;  %v8198_v4 = vld [vmem:[#allocation5 + $0xa18] sm:$0xff]  }
 0x181   :  { %7403 = vmatprep.subr.bf16.mxu1 %v8157_v6  ;;  %5595 = vmatprep.mubr.bf16.mxu0 %v193_v47  ;;  %v8199_v6 = vld [vmem:[#allocation5 + $0xa98] sm:$0xff]   ;;  %v8222_v47 = vld [vmem:[#allocation5 + $0xb08] sm:$0xff]  }
 0x182   :  { %5635 = vmatprep.mubr.bf16.mxu1 %v195_v48  ;;  %v8223_v48 = vld [vmem:[#allocation5 + $0xb88] sm:$0xff]  }
 0x183   :  { %7382 = vmatpush3.bf16.msra.mxu0 %v8158_v7 }
 0x184   :  { %7404 = vmatpush3.bf16.msra.mxu1 %v8159_v8  ;;  %7383 = vmatprep.subr.bf16.mxu0 %v8160_v9  ;;  %v8200_v8 = vld [vmem:[#allocation5 + $0xa60] sm:$0xff]  }
 0x185   :  { %7405 = vmatprep.subr.bf16.mxu1 %v8161_v10 }
 0x187   :  { %7384 = vmatpush3.bf16.msra.mxu0 %v8162_v11  ;;  %v8201_v11 = vld [vmem:[#allocation5 + $0xae0] sm:$0xff]  }
 0x188   :  { %7406 = vmatpush3.bf16.msra.mxu1 %v8163_v12  ;;  %7385 = vmatprep.subr.bf16.mxu0 %v8164_v13 }
 0x189   :  { %7407 = vmatprep.subr.bf16.mxu1 %v8165_v15 }
 0x18b   :  { %7386 = vmatpush3.bf16.msra.mxu0 %v8166_v17  ;;  %v8203_v17 = vld [vmem:[#allocation5 + $0xaa0] sm:$0xff]  }
 0x18c   :  { %7408 = vmatpush3.bf16.msra.mxu1 %v8167_v19  ;;  %7387 = vmatprep.subr.bf16.mxu0 %v8168_v22  ;;  %v8205_v22 = vld [vmem:[#allocation5 + $0xae8] sm:$0xff]  }
 0x18d   :  { %7409 = vmatprep.subr.bf16.mxu1 %v8169_v25  ;;  %v8208_v25 = vld [vmem:[#allocation5 + $0xa70] sm:$0xff]  }
 0x18f   :  { %7388 = vmatpush3.bf16.msra.mxu0 %v8170_v28  ;;  %v8211_v28 = vld [vmem:[#allocation5 + $0xab0] sm:$0xff]  }
 0x190   :  { %7410 = vmatpush3.bf16.msra.mxu1 %v8171_v30  ;;  %7389 = vmatprep.subr.bf16.mxu0 %v8172_v33  ;;  %v8213_v30 = vld [vmem:[#allocation5 + $0xaf8] sm:$0xff]   ;;  %v125_v33 = vld [vmem:[#allocation2 + $0x148] sm:$0xff] }
 0x191   :  { %v7087_v14 = vpop.f32.mrb[8].mxu0  ;;  %7411 = vmatprep.subr.bf16.mxu1 %v8173_v34  ;;  %v197_v34 = vpack.c.bf16 %v125_v33, %v125_v33  ;;  %v8252_v33 = vld [vmem:[#allocation5 + $0xc48] sm:$0xff]  }
 0x192   :  { %v7109_v16 = vpop.f32.mrb[8].mxu1  ;;  %v7088_v18 = vpop.f32.mrb[9].mxu0 }
 0x193   :  { %v7089_v20 = vadd.f32 %v7088_v18, %v7087_v14  ;;  %v7110_v21 = vpop.f32.mrb[9].mxu1  ;;  %v7090_v24 = vpop.f32.mrb[10].mxu0  ;;  %7390 = vmatpush3.bf16.msra.mxu0 %v8174_v35  ;;  %v8202_v14 = vld [vmem:[#allocation5 + $0xa20] sm:$0xff]   ;;  %v127_v35 = vld [vmem:[#allocation2 + $0x158] sm:$0xff] }
 0x194   :  { %v7111_v23 = vadd.f32 %v7110_v21, %v7109_v16  ;;  %v7112_v27 = vpop.f32.mrb[10].mxu1  ;;  %v7091_v29 = vpop.f32.mrb[11].mxu0  ;;  %7412 = vmatpush3.bf16.msra.mxu1 %v8175_v36  ;;  %7391 = vmatprep.subr.bf16.mxu0 %v8176_v37  ;;  %v8207_v24 = vld [vmem:[#allocation5 + $0xaa8] sm:$0xff]   ;;  %v124_v36 = vld [vmem:[#allocation2 + $0x140] sm:$0xff]  ;;  %v126_v37 = vld [vmem:[#allocation2 + $0x150] sm:$0xff] }
 0x195   :  { %v5038_v26 = vadd.f32 %v7089_v20, %v8690_v43  ;;  %v7113_v32 = vpop.f32.mrb[11].mxu1  ;;  %7413 = vmatprep.subr.bf16.mxu1 %v8177_v38  ;;  %v8182_v43 = vld [vmem:[#allocation5 + $0x938] sm:$0xff]   ;;  %v8204_v20 = vld [vmem:[#allocation5 + $0xa68] sm:$0xff]   ;;  %v8210_v27 = vld [vmem:[#allocation5 + $0xa30] sm:$0xff]   ;;  %v199_v38 = vpack.c.bf16 %v127_v35, %v127_v35 }
 0x196   :  { %v8212_v29 = vld [vmem:[#allocation5 + $0xa78] sm:$0xff]   ;;  %v8254_v35 = vld [vmem:[#allocation5 + $0xc08] sm:$0xff]  }
 0x197   :  { %v8693_v31 = vadd.f32 %v7111_v23, %v5038_v26  ;;  %7392 = vmatpush3.bf16.msra.mxu0 %v8178_v39  ;;  %v8206_v23 = vld [vmem:[#allocation5 + $0xa28] sm:$0xff]   ;;  %v8209_v26 = vld [vmem:[#allocation5 + $0xaf0] sm:$0xff]   ;;  %v8215_v32 = vld [vmem:[#allocation5 + $0xab8] sm:$0xff]   ;;  %v196_v39 = vpack.c.bf16 %v124_v36, %v124_v36 }
 0x198   :  { %7414 = vmatpush3.bf16.msra.mxu1 %v8179_v40  ;;  %7393 = vmatprep.subr.bf16.mxu0 %v8180_v41  ;;  %v198_v40 = vpack.c.bf16 %v126_v37, %v126_v37  ;;  %v8216_v41 = vld [vmem:[#allocation5 + $0xb40] sm:$0xff]   ;;  %v8255_v36 = vld [vmem:[#allocation5 + $0xc88] sm:$0xff]   ;;  %v8256_v37 = vld [vmem:[#allocation5 + $0xc50] sm:$0xff]  }
 0x199   :  { %7415 = vmatprep.subr.bf16.mxu1 %v8181_v42  ;;  %v8217_v42 = vld [vmem:[#allocation5 + $0xbc0] sm:$0xff]  }
 0x19b   :  { %7394 = vmatpush3.bf16.msra.mxu0 %v8182_v43  ;;  %v8218_v43 = vld [vmem:[#allocation5 + $0xb00] sm:$0xff]  }
 0x19c   :  { %7416 = vmatpush3.bf16.msra.mxu1 %v8183_v44  ;;  %7423 = vmatprep.subr.bf16.mxu0 %v8184_v53  ;;  %v8219_v44 = vld [vmem:[#allocation5 + $0xb80] sm:$0xff]   ;;  %v8228_v53 = vld [vmem:[#allocation5 + $0xb58] sm:$0xff]  }
 0x19d   :  { %7445 = vmatprep.subr.bf16.mxu1 %v8185_v54  ;;  %v8229_v54 = vld [vmem:[#allocation5 + $0xbd8] sm:$0xff]  }
 0x19e   :  { %5596 = vmatmul.mubr.bf16.vlgmr.msra.gmra.mrb[36].mxu0 %v192_v51  ;;  %v8226_v51 = vld [vmem:[#allocation5 + $0xb10] sm:$0xff]  }
 0x19f   :  { %5636 = vmatmul.mubr.bf16.vlgmr.msra.gmra.mrb[36].mxu1 %v194_v52  ;;  %7424 = vmatpush3.bf16.msra.mxu0 %v8186_v55  ;;  %v8227_v52 = vld [vmem:[#allocation5 + $0xb90] sm:$0xff]  }
 0x1a0   :  { %7446 = vmatpush3.bf16.msra.mxu1 %v8187_v56  ;;  %7425 = vmatprep.subr.bf16.mxu0 %v8188_v57  ;;  %v8230_v56 = vld [vmem:[#allocation5 + $0xb18] sm:$0xff]  }
 0x1a1   :  { %7447 = vmatprep.subr.bf16.mxu1 %v8189_v58  ;;  %5675 = vmatprep.mubr.bf16.mxu0 %v197_v34  ;;  %v8231_v58 = vld [vmem:[#allocation5 + $0xb98] sm:$0xff]   ;;  %v8253_v34 = vld [vmem:[#allocation5 + $0xcc8] sm:$0xff]  }
 0x1a2   :  { %5715 = vmatprep.mubr.bf16.mxu1 %v199_v38  ;;  %v8257_v38 = vld [vmem:[#allocation5 + $0xcd0] sm:$0xff]  }
 0x1a3   :  { %7426 = vmatpush3.bf16.msra.mxu0 %v8190_v59 }
 0x1a4   :  { %7448 = vmatpush3.bf16.msra.mxu1 %v8191_v60  ;;  %7427 = vmatprep.subr.bf16.mxu0 %v8192_v61  ;;  %v8232_v60 = vld [vmem:[#allocation5 + $0xb60] sm:$0xff]  }
 0x1a5   :  { %7449 = vmatprep.subr.bf16.mxu1 %v8193_v62 }
 0x1a7   :  { %7428 = vmatpush3.bf16.msra.mxu0 %v8194_v63  ;;  %v8233_v63 = vld [vmem:[#allocation5 + $0xbe0] sm:$0xff]  }
 0x1a8   :  { %7450 = vmatpush3.bf16.msra.mxu1 %v8195_v0  ;;  %7429 = vmatprep.subr.bf16.mxu0 %v8196_v1 }
 0x1a9   :  { %7451 = vmatprep.subr.bf16.mxu1 %v8197_v2  ;;  %v8234_v2 = vld [vmem:[#allocation5 + $0xb20] sm:$0xff]  }
 0x1ab   :  { %7430 = vmatpush3.bf16.msra.mxu0 %v8198_v4 }
 0x1ac   :  { %7452 = vmatpush3.bf16.msra.mxu1 %v8199_v6  ;;  %7431 = vmatprep.subr.bf16.mxu0 %v8200_v8  ;;  %v8236_v8 = vld [vmem:[#allocation5 + $0xb68] sm:$0xff]  }
 0x1ad   :  { %7453 = vmatprep.subr.bf16.mxu1 %v8201_v11  ;;  %v8238_v11 = vld [vmem:[#allocation5 + $0xb28] sm:$0xff]  }
 0x1af   :  { %7432 = vmatpush3.bf16.msra.mxu0 %v8202_v14  ;;  %v8241_v14 = vld [vmem:[#allocation5 + $0xbf0] sm:$0xff]  }
 0x1b0   :  { %7454 = vmatpush3.bf16.msra.mxu1 %v8203_v17  ;;  %7433 = vmatprep.subr.bf16.mxu0 %v8204_v20  ;;  %v8244_v17 = vld [vmem:[#allocation5 + $0xb78] sm:$0xff]  }
 0x1b1   :  { %v7131_v3 = vpop.f32.mrb[12].mxu0  ;;  %7455 = vmatprep.subr.bf16.mxu1 %v8205_v22  ;;  %v8247_v20 = vld [vmem:[#allocation5 + $0xbb8] sm:$0xff]  }
 0x1b2   :  { %v7153_v5 = vpop.f32.mrb[12].mxu1  ;;  %v7132_v7 = vpop.f32.mrb[13].mxu0  ;;  %v131_v22 = vld [vmem:[#allocation2 + $0x178] sm:$0xff] }
 0x1b3   :  { %v7133_v9 = vadd.f32 %v7132_v7, %v7131_v3  ;;  %v7154_v10 = vpop.f32.mrb[13].mxu1  ;;  %v7134_v13 = vpop.f32.mrb[14].mxu0  ;;  %7434 = vmatpush3.bf16.msra.mxu0 %v8206_v23  ;;  %v128_v23 = vld [vmem:[#allocation2 + $0x160] sm:$0xff] }
 0x1b4   :  { %v7155_v12 = vadd.f32 %v7154_v10, %v7153_v5  ;;  %v7156_v16 = vpop.f32.mrb[14].mxu1  ;;  %v7135_v18 = vpop.f32.mrb[15].mxu0  ;;  %7456 = vmatpush3.bf16.msra.mxu1 %v8207_v24  ;;  %7435 = vmatprep.subr.bf16.mxu0 %v8208_v25  ;;  %v8235_v5 = vld [vmem:[#allocation5 + $0xba0] sm:$0xff]   ;;  %v8237_v10 = vld [vmem:[#allocation5 + $0xbe8] sm:$0xff]   ;;  %v8240_v13 = vld [vmem:[#allocation5 + $0xb70] sm:$0xff]   ;;  %v203_v25 = vpack.c.bf16 %v131_v22, %v131_v22 }
 0x1b5   :  { %v5118_v15 = vadd.f32 %v7133_v9, %v8693_v31  ;;  %v7157_v21 = vpop.f32.mrb[15].mxu1  ;;  %7457 = vmatprep.subr.bf16.mxu1 %v8209_v26  ;;  %v8214_v31 = vld [vmem:[#allocation5 + $0xa38] sm:$0xff]   ;;  %v8243_v16 = vld [vmem:[#allocation5 + $0xbb0] sm:$0xff]   ;;  %v200_v26 = vpack.c.bf16 %v128_v23, %v128_v23  ;;  %v8285_v22 = vld [vmem:[#allocation5 + $0xdc8] sm:$0xff]  }
 0x1b6   :  { %v8245_v18 = vld [vmem:[#allocation5 + $0xbf8] sm:$0xff]   ;;  %v129_v21 = vld [vmem:[#allocation2 + $0x168] sm:$0xff] }
 0x1b7   :  { %v8696_v19 = vadd.f32 %v7155_v12, %v5118_v15  ;;  %7436 = vmatpush3.bf16.msra.mxu0 %v8210_v27  ;;  %v8239_v12 = vld [vmem:[#allocation5 + $0xba8] sm:$0xff]   ;;  %v8242_v15 = vld [vmem:[#allocation5 + $0xb30] sm:$0xff]   ;;  %v201_v24 = vpack.c.bf16 %v129_v21, %v129_v21 }
 0x1b8   :  { %7458 = vmatpush3.bf16.msra.mxu1 %v8211_v28  ;;  %7437 = vmatprep.subr.bf16.mxu0 %v8212_v29  ;;  %v130_v27 = vld [vmem:[#allocation2 + $0x170] sm:$0xff]  ;;  %v8248_v29 = vld [vmem:[#allocation5 + $0xc40] sm:$0xff]   ;;  %v8284_v21 = vld [vmem:[#allocation5 + $0xd48] sm:$0xff]  }
 0x1b9   :  { %7459 = vmatprep.subr.bf16.mxu1 %v8213_v30  ;;  %v202_v28 = vpack.c.bf16 %v130_v27, %v130_v27  ;;  %v8249_v30 = vld [vmem:[#allocation5 + $0xcc0] sm:$0xff]   ;;  %v8286_v23 = vld [vmem:[#allocation5 + $0xd08] sm:$0xff]   ;;  %v8290_v27 = vld [vmem:[#allocation5 + $0xd10] sm:$0xff]  }
 0x1bb   :  { %7438 = vmatpush3.bf16.msra.mxu0 %v8214_v31  ;;  %v8250_v31 = vld [vmem:[#allocation5 + $0xc00] sm:$0xff]  }
 0x1bc   :  { %7460 = vmatpush3.bf16.msra.mxu1 %v8215_v32  ;;  %7467 = vmatprep.subr.bf16.mxu0 %v8216_v41  ;;  %v8251_v32 = vld [vmem:[#allocation5 + $0xc80] sm:$0xff]   ;;  %v8260_v41 = vld [vmem:[#allocation5 + $0xc58] sm:$0xff]  }
 0x1bd   :  { %7489 = vmatprep.subr.bf16.mxu1 %v8217_v42 }
 0x1be   :  { %5676 = vmatmul.mubr.bf16.vlgmr.msra.gmra.mrb[40].mxu0 %v196_v39  ;;  %v8258_v39 = vld [vmem:[#allocation5 + $0xc10] sm:$0xff]  }
 0x1bf   :  { %5716 = vmatmul.mubr.bf16.vlgmr.msra.gmra.mrb[40].mxu1 %v198_v40  ;;  %7468 = vmatpush3.bf16.msra.mxu0 %v8218_v43  ;;  %v8259_v40 = vld [vmem:[#allocation5 + $0xc90] sm:$0xff]   ;;  %v8261_v43 = vld [vmem:[#allocation5 + $0xcd8] sm:$0xff]  }
 0x1c0   :  { %7490 = vmatpush3.bf16.msra.mxu1 %v8219_v44  ;;  %7469 = vmatprep.subr.bf16.mxu0 %v8220_v45  ;;  %v8262_v45 = vld [vmem:[#allocation5 + $0xc18] sm:$0xff]  }
 0x1c1   :  { %7491 = vmatprep.subr.bf16.mxu1 %v8221_v46  ;;  %5755 = vmatprep.mubr.bf16.mxu0 %v201_v24  ;;  %v8287_v24 = vld [vmem:[#allocation5 + $0xd88] sm:$0xff]  }
 0x1c2   :  { %5795 = vmatprep.mubr.bf16.mxu1 %v203_v25  ;;  %v8288_v25 = vld [vmem:[#allocation5 + $0xd50] sm:$0xff]  }
 0x1c3   :  { %7470 = vmatpush3.bf16.msra.mxu0 %v8222_v47  ;;  %v8263_v47 = vld [vmem:[#allocation5 + $0xc98] sm:$0xff]  }
 0x1c4   :  { %7492 = vmatpush3.bf16.msra.mxu1 %v8223_v48  ;;  %7471 = vmatprep.subr.bf16.mxu0 %v8224_v49 }
 0x1c5   :  { %7493 = vmatprep.subr.bf16.mxu1 %v8225_v50  ;;  %v8264_v50 = vld [vmem:[#allocation5 + $0xc60] sm:$0xff]  }
 0x1c7   :  { %7472 = vmatpush3.bf16.msra.mxu0 %v8226_v51 }
 0x1c8   :  { %7494 = vmatpush3.bf16.msra.mxu1 %v8227_v52  ;;  %7473 = vmatprep.subr.bf16.mxu0 %v8228_v53  ;;  %v8265_v53 = vld [vmem:[#allocation5 + $0xce0] sm:$0xff]  }
 0x1c9   :  { %7495 = vmatprep.subr.bf16.mxu1 %v8229_v54 }
 0x1cb   :  { %7474 = vmatpush3.bf16.msra.mxu0 %v8230_v56  ;;  %v8266_v56 = vld [vmem:[#allocation5 + $0xc20] sm:$0xff]  }
 0x1cc   :  { %7496 = vmatpush3.bf16.msra.mxu1 %v8231_v58  ;;  %7475 = vmatprep.subr.bf16.mxu0 %v8232_v60  ;;  %v8267_v58 = vld [vmem:[#allocation5 + $0xca0] sm:$0xff]  }
 0x1cd   :  { %7497 = vmatprep.subr.bf16.mxu1 %v8233_v63  ;;  %v8270_v63 = vld [vmem:[#allocation5 + $0xc28] sm:$0xff]  }
 0x1cf   :  { %7476 = vmatpush3.bf16.msra.mxu0 %v8234_v2  ;;  %v8273_v2 = vld [vmem:[#allocation5 + $0xcf0] sm:$0xff]  }
 0x1d0   :  { %7498 = vmatpush3.bf16.msra.mxu1 %v8235_v5  ;;  %7477 = vmatprep.subr.bf16.mxu0 %v8236_v8  ;;  %v8276_v5 = vld [vmem:[#allocation5 + $0xc78] sm:$0xff]  }
 0x1d1   :  { %v7175_v55 = vpop.f32.mrb[16].mxu0  ;;  %7499 = vmatprep.subr.bf16.mxu1 %v8237_v10  ;;  %v8279_v8 = vld [vmem:[#allocation5 + $0xcb8] sm:$0xff]  }
 0x1d2   :  { %v7197_v57 = vpop.f32.mrb[16].mxu1  ;;  %v7176_v59 = vpop.f32.mrb[17].mxu0  ;;  %v135_v10 = vld [vmem:[#allocation2 + $0x198] sm:$0xff] }
 0x1d3   :  { %v7177_v61 = vadd.f32 %v7176_v59, %v7175_v55  ;;  %v7198_v62 = vpop.f32.mrb[17].mxu1  ;;  %v7178_v1 = vpop.f32.mrb[18].mxu0  ;;  %7478 = vmatpush3.bf16.msra.mxu0 %v8238_v11 }
 0x1d4   :  { %v7199_v0 = vadd.f32 %v7198_v62, %v7197_v57  ;;  %v7200_v4 = vpop.f32.mrb[18].mxu1  ;;  %v7179_v6 = vpop.f32.mrb[19].mxu0  ;;  %7500 = vmatpush3.bf16.msra.mxu1 %v8239_v12  ;;  %7479 = vmatprep.subr.bf16.mxu0 %v8240_v13  ;;  %v8269_v62 = vld [vmem:[#allocation5 + $0xce8] sm:$0xff]   ;;  %v8272_v1 = vld [vmem:[#allocation5 + $0xc70] sm:$0xff]   ;;  %v207_v12 = vpack.c.bf16 %v135_v10, %v135_v10  ;;  %v132_v13 = vld [vmem:[#allocation2 + $0x180] sm:$0xff] }
 0x1d5   :  { %v5198_v3 = vadd.f32 %v7177_v61, %v8696_v19  ;;  %v7201_v9 = vpop.f32.mrb[19].mxu1  ;;  %7501 = vmatprep.subr.bf16.mxu1 %v8241_v14  ;;  %v8246_v19 = vld [vmem:[#allocation5 + $0xb38] sm:$0xff]   ;;  %v8268_v61 = vld [vmem:[#allocation5 + $0xc68] sm:$0xff]   ;;  %v8275_v4 = vld [vmem:[#allocation5 + $0xcb0] sm:$0xff]  }
 0x1d6   :  { %v8277_v6 = vld [vmem:[#allocation5 + $0xcf8] sm:$0xff]   ;;  %v133_v9 = vld [vmem:[#allocation2 + $0x188] sm:$0xff]  ;;  %v134_v14 = vld [vmem:[#allocation2 + $0x190] sm:$0xff] }
 0x1d7   :  { %v8699_v7 = vadd.f32 %v7199_v0, %v5198_v3  ;;  %7480 = vmatpush3.bf16.msra.mxu0 %v8242_v15  ;;  %v8271_v0 = vld [vmem:[#allocation5 + $0xca8] sm:$0xff]   ;;  %v8274_v3 = vld [vmem:[#allocation5 + $0xc30] sm:$0xff]   ;;  %v205_v11 = vpack.c.bf16 %v133_v9, %v133_v9  ;;  %v204_v15 = vpack.c.bf16 %v132_v13, %v132_v13 }
 0x1d8   :  { %7502 = vmatpush3.bf16.msra.mxu1 %v8243_v16  ;;  %7481 = vmatprep.subr.bf16.mxu0 %v8244_v17  ;;  %v206_v16 = vpack.c.bf16 %v134_v14, %v134_v14  ;;  %v8280_v17 = vld [vmem:[#allocation5 + $0xd40] sm:$0xff]   ;;  %v8316_v9 = vld [vmem:[#allocation5 + $0xe48] sm:$0xff]   ;;  %v8320_v13 = vld [vmem:[#allocation5 + $0xe50] sm:$0xff]  }
 0x1d9   :  { %7503 = vmatprep.subr.bf16.mxu1 %v8245_v18  ;;  %v8281_v18 = vld [vmem:[#allocation5 + $0xdc0] sm:$0xff]   ;;  %v8317_v10 = vld [vmem:[#allocation5 + $0xec8] sm:$0xff]   ;;  %v8321_v14 = vld [vmem:[#allocation5 + $0xed0] sm:$0xff]  }
 0x1db   :  { %7482 = vmatpush3.bf16.msra.mxu0 %v8246_v19  ;;  %v8282_v19 = vld [vmem:[#allocation5 + $0xd00] sm:$0xff]  }
 0x1dc   :  { %7504 = vmatpush3.bf16.msra.mxu1 %v8247_v20  ;;  %7511 = vmatprep.subr.bf16.mxu0 %v8248_v29  ;;  %v8283_v20 = vld [vmem:[#allocation5 + $0xd80] sm:$0xff]   ;;  %v8292_v29 = vld [vmem:[#allocation5 + $0xd58] sm:$0xff]  }
 0x1dd   :  { %7533 = vmatprep.subr.bf16.mxu1 %v8249_v30  ;;  %v8293_v30 = vld [vmem:[#allocation5 + $0xdd8] sm:$0xff]  }
 0x1de   :  { %5756 = vmatmul.mubr.bf16.vlgmr.msra.gmra.mrb[44].mxu0 %v200_v26  ;;  %v8289_v26 = vld [vmem:[#allocation5 + $0xdd0] sm:$0xff]  }
 0x1df   :  { %5796 = vmatmul.mubr.bf16.vlgmr.msra.gmra.mrb[44].mxu1 %v202_v28  ;;  %7512 = vmatpush3.bf16.msra.mxu0 %v8250_v31  ;;  %v8291_v28 = vld [vmem:[#allocation5 + $0xd90] sm:$0xff]  }
 0x1e0   :  { %7534 = vmatpush3.bf16.msra.mxu1 %v8251_v32  ;;  %7513 = vmatprep.subr.bf16.mxu0 %v8252_v33  ;;  %v8294_v32 = vld [vmem:[#allocation5 + $0xd18] sm:$0xff]  }
 0x1e1   :  { %7535 = vmatprep.subr.bf16.mxu1 %v8253_v34  ;;  %5835 = vmatprep.mubr.bf16.mxu0 %v205_v11  ;;  %v8295_v34 = vld [vmem:[#allocation5 + $0xd98] sm:$0xff]   ;;  %v8318_v11 = vld [vmem:[#allocation5 + $0xe08] sm:$0xff]  }
 0x1e2   :  { %5875 = vmatprep.mubr.bf16.mxu1 %v207_v12  ;;  %v8319_v12 = vld [vmem:[#allocation5 + $0xe88] sm:$0xff]  }
 0x1e3   :  { %7514 = vmatpush3.bf16.msra.mxu0 %v8254_v35 }
 0x1e4   :  { %7536 = vmatpush3.bf16.msra.mxu1 %v8255_v36  ;;  %7515 = vmatprep.subr.bf16.mxu0 %v8256_v37  ;;  %v8296_v36 = vld [vmem:[#allocation5 + $0xd60] sm:$0xff]  }
 0x1e5   :  { %7537 = vmatprep.subr.bf16.mxu1 %v8257_v38 }
 0x1e7   :  { %7516 = vmatpush3.bf16.msra.mxu0 %v8258_v39  ;;  %v8297_v39 = vld [vmem:[#allocation5 + $0xde0] sm:$0xff]  }
 0x1e8   :  { %7538 = vmatpush3.bf16.msra.mxu1 %v8259_v40  ;;  %7517 = vmatprep.subr.bf16.mxu0 %v8260_v41 }
 0x1e9   :  { %7539 = vmatprep.subr.bf16.mxu1 %v8261_v43 }
 0x1eb   :  { %7518 = vmatpush3.bf16.msra.mxu0 %v8262_v45  ;;  %v8299_v45 = vld [vmem:[#allocation5 + $0xda0] sm:$0xff]  }
 0x1ec   :  { %7540 = vmatpush3.bf16.msra.mxu1 %v8263_v47  ;;  %7519 = vmatprep.subr.bf16.mxu0 %v8264_v50  ;;  %v8301_v50 = vld [vmem:[#allocation5 + $0xde8] sm:$0xff]  }
 0x1ed   :  { %7541 = vmatprep.subr.bf16.mxu1 %v8265_v53  ;;  %v8304_v53 = vld [vmem:[#allocation5 + $0xd70] sm:$0xff]  }
 0x1ef   :  { %7520 = vmatpush3.bf16.msra.mxu0 %v8266_v56  ;;  %v8307_v56 = vld [vmem:[#allocation5 + $0xdb0] sm:$0xff]  }
 0x1f0   :  { %7542 = vmatpush3.bf16.msra.mxu1 %v8267_v58  ;;  %7521 = vmatprep.subr.bf16.mxu0 %v8268_v61  ;;  %v8309_v58 = vld [vmem:[#allocation5 + $0xdf8] sm:$0xff]   ;;  %v137_v61 = vld [vmem:[#allocation2 + $0x1a8] sm:$0xff] }
 0x1f1   :  { %v7219_v42 = vpop.f32.mrb[20].mxu0  ;;  %7543 = vmatprep.subr.bf16.mxu1 %v8269_v62  ;;  %v209_v62 = vpack.c.bf16 %v137_v61, %v137_v61  ;;  %v8348_v61 = vld [vmem:[#allocation5 + $0xf48] sm:$0xff]  }
 0x1f2   :  { %v7241_v44 = vpop.f32.mrb[20].mxu1  ;;  %v7220_v46 = vpop.f32.mrb[21].mxu0 }
 0x1f3   :  { %v7221_v48 = vadd.f32 %v7220_v46, %v7219_v42  ;;  %v7242_v49 = vpop.f32.mrb[21].mxu1  ;;  %v7222_v52 = vpop.f32.mrb[22].mxu0  ;;  %7522 = vmatpush3.bf16.msra.mxu0 %v8270_v63  ;;  %v8298_v42 = vld [vmem:[#allocation5 + $0xd20] sm:$0xff]   ;;  %v139_v63 = vld [vmem:[#allocation2 + $0x1b8] sm:$0xff] }
 0x1f4   :  { %v7243_v51 = vadd.f32 %v7242_v49, %v7241_v44  ;;  %v7244_v55 = vpop.f32.mrb[22].mxu1  ;;  %v7223_v57 = vpop.f32.mrb[23].mxu0  ;;  %7544 = vmatpush3.bf16.msra.mxu1 %v8271_v0  ;;  %7523 = vmatprep.subr.bf16.mxu0 %v8272_v1  ;;  %v8303_v52 = vld [vmem:[#allocation5 + $0xda8] sm:$0xff]   ;;  %v136_v0 = vld [vmem:[#allocation2 + $0x1a0] sm:$0xff]  ;;  %v138_v1 = vld [vmem:[#allocation2 + $0x1b0] sm:$0xff] }
 0x1f5   :  { %v5278_v54 = vadd.f32 %v7221_v48, %v8699_v7  ;;  %v7245_v60 = vpop.f32.mrb[23].mxu1  ;;  %7545 = vmatprep.subr.bf16.mxu1 %v8273_v2  ;;  %v8278_v7 = vld [vmem:[#allocation5 + $0xc38] sm:$0xff]   ;;  %v8300_v48 = vld [vmem:[#allocation5 + $0xd68] sm:$0xff]   ;;  %v8306_v55 = vld [vmem:[#allocation5 + $0xd30] sm:$0xff]   ;;  %v211_v2 = vpack.c.bf16 %v139_v63, %v139_v63 }
 0x1f6   :  { %v8308_v57 = vld [vmem:[#allocation5 + $0xd78] sm:$0xff]   ;;  %v8350_v63 = vld [vmem:[#allocation5 + $0xf08] sm:$0xff]  }
 0x1f7   :  { %v8702_v59 = vadd.f32 %v7243_v51, %v5278_v54  ;;  %7524 = vmatpush3.bf16.msra.mxu0 %v8274_v3  ;;  %v8302_v51 = vld [vmem:[#allocation5 + $0xd28] sm:$0xff]   ;;  %v8305_v54 = vld [vmem:[#allocation5 + $0xdf0] sm:$0xff]   ;;  %v8311_v60 = vld [vmem:[#allocation5 + $0xdb8] sm:$0xff]   ;;  %v208_v3 = vpack.c.bf16 %v136_v0, %v136_v0 }
 0x1f8   :  { %7546 = vmatpush3.bf16.msra.mxu1 %v8275_v4  ;;  %7525 = vmatprep.subr.bf16.mxu0 %v8276_v5  ;;  %v210_v4 = vpack.c.bf16 %v138_v1, %v138_v1  ;;  %v8312_v5 = vld [vmem:[#allocation5 + $0xe40] sm:$0xff]   ;;  %v8351_v0 = vld [vmem:[#allocation5 + $0xf88] sm:$0xff]   ;;  %v8352_v1 = vld [vmem:[#allocation5 + $0xf50] sm:$0xff]  }
 0x1f9   :  { %7547 = vmatprep.subr.bf16.mxu1 %v8277_v6  ;;  %v8313_v6 = vld [vmem:[#allocation5 + $0xec0] sm:$0xff]  }
 0x1fb   :  { %7526 = vmatpush3.bf16.msra.mxu0 %v8278_v7  ;;  %v8314_v7 = vld [vmem:[#allocation5 + $0xe00] sm:$0xff]  }
 0x1fc   :  { %7548 = vmatpush3.bf16.msra.mxu1 %v8279_v8  ;;  %7555 = vmatprep.subr.bf16.mxu0 %v8280_v17  ;;  %v8315_v8 = vld [vmem:[#allocation5 + $0xe80] sm:$0xff]   ;;  %v8324_v17 = vld [vmem:[#allocation5 + $0xe58] sm:$0xff]  }
 0x1fd   :  { %7577 = vmatprep.subr.bf16.mxu1 %v8281_v18  ;;  %v8325_v18 = vld [vmem:[#allocation5 + $0xed8] sm:$0xff]  }
 0x1fe   :  { %5836 = vmatmul.mubr.bf16.vlgmr.msra.gmra.mrb[48].mxu0 %v204_v15  ;;  %v8322_v15 = vld [vmem:[#allocation5 + $0xe10] sm:$0xff]  }
 0x1ff   :  { %5876 = vmatmul.mubr.bf16.vlgmr.msra.gmra.mrb[48].mxu1 %v206_v16  ;;  %7556 = vmatpush3.bf16.msra.mxu0 %v8282_v19  ;;  %v8323_v16 = vld [vmem:[#allocation5 + $0xe90] sm:$0xff]  }
 0x200   :  { %7578 = vmatpush3.bf16.msra.mxu1 %v8283_v20  ;;  %7557 = vmatprep.subr.bf16.mxu0 %v8284_v21  ;;  %v8326_v20 = vld [vmem:[#allocation5 + $0xe18] sm:$0xff]  }
 0x201   :  { %7579 = vmatprep.subr.bf16.mxu1 %v8285_v22  ;;  %5915 = vmatprep.mubr.bf16.mxu0 %v209_v62  ;;  %v8327_v22 = vld [vmem:[#allocation5 + $0xe98] sm:$0xff]   ;;  %v8349_v62 = vld [vmem:[#allocation5 + $0xfc8] sm:$0xff]  }
 0x202   :  { %5955 = vmatprep.mubr.bf16.mxu1 %v211_v2  ;;  %v8353_v2 = vld [vmem:[#allocation5 + $0xfd0] sm:$0xff]  }
 0x203   :  { %7558 = vmatpush3.bf16.msra.mxu0 %v8286_v23 }
 0x204   :  { %7580 = vmatpush3.bf16.msra.mxu1 %v8287_v24  ;;  %7559 = vmatprep.subr.bf16.mxu0 %v8288_v25  ;;  %v8328_v24 = vld [vmem:[#allocation5 + $0xe60] sm:$0xff]  }
 0x205   :  { %7581 = vmatprep.subr.bf16.mxu1 %v8289_v26 }
 0x207   :  { %7560 = vmatpush3.bf16.msra.mxu0 %v8290_v27  ;;  %v8329_v27 = vld [vmem:[#allocation5 + $0xee0] sm:$0xff]  }
 0x208   :  { %7582 = vmatpush3.bf16.msra.mxu1 %v8291_v28  ;;  %7561 = vmatprep.subr.bf16.mxu0 %v8292_v29 }
 0x209   :  { %7583 = vmatprep.subr.bf16.mxu1 %v8293_v30  ;;  %v8330_v30 = vld [vmem:[#allocation5 + $0xe20] sm:$0xff]  }
 0x20b   :  { %7562 = vmatpush3.bf16.msra.mxu0 %v8294_v32 }
 0x20c   :  { %7584 = vmatpush3.bf16.msra.mxu1 %v8295_v34  ;;  %7563 = vmatprep.subr.bf16.mxu0 %v8296_v36  ;;  %v8332_v36 = vld [vmem:[#allocation5 + $0xe68] sm:$0xff]  }
 0x20d   :  { %7585 = vmatprep.subr.bf16.mxu1 %v8297_v39  ;;  %v8334_v39 = vld [vmem:[#allocation5 + $0xe28] sm:$0xff]  }
 0x20f   :  { %7564 = vmatpush3.bf16.msra.mxu0 %v8298_v42  ;;  %v8337_v42 = vld [vmem:[#allocation5 + $0xef0] sm:$0xff]  }
 0x210   :  { %7586 = vmatpush3.bf16.msra.mxu1 %v8299_v45  ;;  %7565 = vmatprep.subr.bf16.mxu0 %v8300_v48  ;;  %v8340_v45 = vld [vmem:[#allocation5 + $0xe78] sm:$0xff]  }
 0x211   :  { %v7263_v31 = vpop.f32.mrb[24].mxu0  ;;  %7587 = vmatprep.subr.bf16.mxu1 %v8301_v50  ;;  %v8343_v48 = vld [vmem:[#allocation5 + $0xeb8] sm:$0xff]  }
 0x212   :  { %v7285_v33 = vpop.f32.mrb[24].mxu1  ;;  %v7264_v35 = vpop.f32.mrb[25].mxu0  ;;  %v143_v50 = vld [vmem:[#allocation2 + $0x1d8] sm:$0xff] }
 0x213   :  { %v7265_v37 = vadd.f32 %v7264_v35, %v7263_v31  ;;  %v7286_v38 = vpop.f32.mrb[25].mxu1  ;;  %v7266_v41 = vpop.f32.mrb[26].mxu0  ;;  %7566 = vmatpush3.bf16.msra.mxu0 %v8302_v51  ;;  %v140_v51 = vld [vmem:[#allocation2 + $0x1c0] sm:$0xff] }
 0x214   :  { %v7287_v40 = vadd.f32 %v7286_v38, %v7285_v33  ;;  %v7288_v44 = vpop.f32.mrb[26].mxu1  ;;  %v7267_v46 = vpop.f32.mrb[27].mxu0  ;;  %7588 = vmatpush3.bf16.msra.mxu1 %v8303_v52  ;;  %7567 = vmatprep.subr.bf16.mxu0 %v8304_v53  ;;  %v8331_v33 = vld [vmem:[#allocation5 + $0xea0] sm:$0xff]   ;;  %v8333_v38 = vld [vmem:[#allocation5 + $0xee8] sm:$0xff]   ;;  %v8336_v41 = vld [vmem:[#allocation5 + $0xe70] sm:$0xff]   ;;  %v215_v53 = vpack.c.bf16 %v143_v50, %v143_v50 }
 0x215   :  { %v5358_v43 = vadd.f32 %v7265_v37, %v8702_v59  ;;  %v7289_v49 = vpop.f32.mrb[27].mxu1  ;;  %7589 = vmatprep.subr.bf16.mxu1 %v8305_v54  ;;  %v8310_v59 = vld [vmem:[#allocation5 + $0xd38] sm:$0xff]   ;;  %v8339_v44 = vld [vmem:[#allocation5 + $0xeb0] sm:$0xff]   ;;  %v212_v54 = vpack.c.bf16 %v140_v51, %v140_v51  ;;  %v8381_v50 = vld [vmem:[#allocation5 + $0x10c8] sm:$0xff]  }
 0x216   :  { %v8341_v46 = vld [vmem:[#allocation5 + $0xef8] sm:$0xff]   ;;  %v141_v49 = vld [vmem:[#allocation2 + $0x1c8] sm:$0xff] }
 0x217   :  { %v8705_v47 = vadd.f32 %v7287_v40, %v5358_v43  ;;  %7568 = vmatpush3.bf16.msra.mxu0 %v8306_v55  ;;  %v8335_v40 = vld [vmem:[#allocation5 + $0xea8] sm:$0xff]   ;;  %v8338_v43 = vld [vmem:[#allocation5 + $0xe30] sm:$0xff]   ;;  %v213_v52 = vpack.c.bf16 %v141_v49, %v141_v49 }
 0x218   :  { %7590 = vmatpush3.bf16.msra.mxu1 %v8307_v56  ;;  %7569 = vmatprep.subr.bf16.mxu0 %v8308_v57  ;;  %v142_v55 = vld [vmem:[#allocation2 + $0x1d0] sm:$0xff]  ;;  %v8344_v57 = vld [vmem:[#allocation5 + $0xf40] sm:$0xff]   ;;  %v8380_v49 = vld [vmem:[#allocation5 + $0x1048] sm:$0xff]  }
 0x219   :  { %7591 = vmatprep.subr.bf16.mxu1 %v8309_v58  ;;  %v214_v56 = vpack.c.bf16 %v142_v55, %v142_v55  ;;  %v8345_v58 = vld [vmem:[#allocation5 + $0xfc0] sm:$0xff]   ;;  %v8382_v51 = vld [vmem:[#allocation5 + $0x1008] sm:$0xff]   ;;  %v8386_v55 = vld [vmem:[#allocation5 + $0x1010] sm:$0xff]  }
 0x21b   :  { %7570 = vmatpush3.bf16.msra.mxu0 %v8310_v59  ;;  %v8346_v59 = vld [vmem:[#allocation5 + $0xf00] sm:$0xff]  }
 0x21c   :  { %7592 = vmatpush3.bf16.msra.mxu1 %v8311_v60  ;;  %7599 = vmatprep.subr.bf16.mxu0 %v8312_v5  ;;  %v8347_v60 = vld [vmem:[#allocation5 + $0xf80] sm:$0xff]   ;;  %v8356_v5 = vld [vmem:[#allocation5 + $0xf58] sm:$0xff]  }
 0x21d   :  { %7621 = vmatprep.subr.bf16.mxu1 %v8313_v6  ;;  %v8357_v6 = vld [vmem:[#allocation5 + $0xfd8] sm:$0xff]  }
 0x21e   :  { %5916 = vmatmul.mubr.bf16.vlgmr.msra.gmra.mrb[52].mxu0 %v208_v3  ;;  %v8354_v3 = vld [vmem:[#allocation5 + $0xf10] sm:$0xff]  }
 0x21f   :  { %5956 = vmatmul.mubr.bf16.vlgmr.msra.gmra.mrb[52].mxu1 %v210_v4  ;;  %7600 = vmatpush3.bf16.msra.mxu0 %v8314_v7  ;;  %v8355_v4 = vld [vmem:[#allocation5 + $0xf90] sm:$0xff]  }
 0x220   :  { %7622 = vmatpush3.bf16.msra.mxu1 %v8315_v8  ;;  %7601 = vmatprep.subr.bf16.mxu0 %v8316_v9  ;;  %v8358_v8 = vld [vmem:[#allocation5 + $0xf18] sm:$0xff]  }
 0x221   :  { %7623 = vmatprep.subr.bf16.mxu1 %v8317_v10  ;;  %5995 = vmatprep.mubr.bf16.mxu0 %v213_v52  ;;  %v8359_v10 = vld [vmem:[#allocation5 + $0xf98] sm:$0xff]   ;;  %v8383_v52 = vld [vmem:[#allocation5 + $0x1088] sm:$0xff]  }
 0x222   :  { %6035 = vmatprep.mubr.bf16.mxu1 %v215_v53  ;;  %v8384_v53 = vld [vmem:[#allocation5 + $0x1050] sm:$0xff]  }
 0x223   :  { %7602 = vmatpush3.bf16.msra.mxu0 %v8318_v11 }
 0x224   :  { %7624 = vmatpush3.bf16.msra.mxu1 %v8319_v12  ;;  %7603 = vmatprep.subr.bf16.mxu0 %v8320_v13  ;;  %v8360_v12 = vld [vmem:[#allocation5 + $0xf60] sm:$0xff]  }
 0x225   :  { %7625 = vmatprep.subr.bf16.mxu1 %v8321_v14 }
 0x227   :  { %7604 = vmatpush3.bf16.msra.mxu0 %v8322_v15  ;;  %v8361_v15 = vld [vmem:[#allocation5 + $0xfe0] sm:$0xff]  }
 0x228   :  { %7626 = vmatpush3.bf16.msra.mxu1 %v8323_v16  ;;  %7605 = vmatprep.subr.bf16.mxu0 %v8324_v17 }
 0x229   :  { %7627 = vmatprep.subr.bf16.mxu1 %v8325_v18  ;;  %v8362_v18 = vld [vmem:[#allocation5 + $0xf20] sm:$0xff]  }
 0x22b   :  { %7606 = vmatpush3.bf16.msra.mxu0 %v8326_v20 }
 0x22c   :  { %7628 = vmatpush3.bf16.msra.mxu1 %v8327_v22  ;;  %7607 = vmatprep.subr.bf16.mxu0 %v8328_v24  ;;  %v8364_v24 = vld [vmem:[#allocation5 + $0xf68] sm:$0xff]  }
 0x22d   :  { %7629 = vmatprep.subr.bf16.mxu1 %v8329_v27  ;;  %v8366_v27 = vld [vmem:[#allocation5 + $0xf28] sm:$0xff]  }
 0x22f   :  { %7608 = vmatpush3.bf16.msra.mxu0 %v8330_v30  ;;  %v8369_v30 = vld [vmem:[#allocation5 + $0xff0] sm:$0xff]  }
 0x230   :  { %7630 = vmatpush3.bf16.msra.mxu1 %v8331_v33  ;;  %7609 = vmatprep.subr.bf16.mxu0 %v8332_v36  ;;  %v8372_v33 = vld [vmem:[#allocation5 + $0xf78] sm:$0xff]  }
 0x231   :  { %v7307_v19 = vpop.f32.mrb[28].mxu0  ;;  %7631 = vmatprep.subr.bf16.mxu1 %v8333_v38  ;;  %v8375_v36 = vld [vmem:[#allocation5 + $0xfb8] sm:$0xff]  }
 0x232   :  { %v7329_v21 = vpop.f32.mrb[28].mxu1  ;;  %v7308_v23 = vpop.f32.mrb[29].mxu0  ;;  %v147_v38 = vld [vmem:[#allocation2 + $0x1f8] sm:$0xff] }
 0x233   :  { %v7309_v25 = vadd.f32 %v7308_v23, %v7307_v19  ;;  %v7330_v26 = vpop.f32.mrb[29].mxu1  ;;  %v7310_v29 = vpop.f32.mrb[30].mxu0  ;;  %7610 = vmatpush3.bf16.msra.mxu0 %v8334_v39 }
 0x234   :  { %v7331_v28 = vadd.f32 %v7330_v26, %v7329_v21  ;;  %v7332_v32 = vpop.f32.mrb[30].mxu1  ;;  %v7311_v34 = vpop.f32.mrb[31].mxu0  ;;  %7632 = vmatpush3.bf16.msra.mxu1 %v8335_v40  ;;  %7611 = vmatprep.subr.bf16.mxu0 %v8336_v41  ;;  %v8363_v21 = vld [vmem:[#allocation5 + $0xfa0] sm:$0xff]   ;;  %v8365_v26 = vld [vmem:[#allocation5 + $0xfe8] sm:$0xff]   ;;  %v8368_v29 = vld [vmem:[#allocation5 + $0xf70] sm:$0xff]   ;;  %v219_v40 = vpack.c.bf16 %v147_v38, %v147_v38 }
 0x235   :  { %v5438_v31 = vadd.f32 %v7309_v25, %v8705_v47  ;;  %v7333_v37 = vpop.f32.mrb[31].mxu1  ;;  %7633 = vmatprep.subr.bf16.mxu1 %v8337_v42  ;;  %v8342_v47 = vld [vmem:[#allocation5 + $0xe38] sm:$0xff]   ;;  %v8371_v32 = vld [vmem:[#allocation5 + $0xfb0] sm:$0xff]   ;;  %v144_v41 = vld [vmem:[#allocation2 + $0x1e0] sm:$0xff] }
 0x236   :  { %v8373_v34 = vld [vmem:[#allocation5 + $0xff8] sm:$0xff]   ;;  %v145_v37 = vld [vmem:[#allocation2 + $0x1e8] sm:$0xff]  ;;  %v146_v42 = vld [vmem:[#allocation2 + $0x1f0] sm:$0xff] }
 0x237   :  { %v8708_v35 = vadd.f32 %v7331_v28, %v5438_v31  ;;  %7612 = vmatpush3.bf16.msra.mxu0 %v8338_v43  ;;  %v8367_v28 = vld [vmem:[#allocation5 + $0xfa8] sm:$0xff]   ;;  %v8370_v31 = vld [vmem:[#allocation5 + $0xf30] sm:$0xff]   ;;  %v217_v39 = vpack.c.bf16 %v145_v37, %v145_v37  ;;  %v216_v43 = vpack.c.bf16 %v144_v41, %v144_v41 }
 0x238   :  { %7634 = vmatpush3.bf16.msra.mxu1 %v8339_v44  ;;  %7613 = vmatprep.subr.bf16.mxu0 %v8340_v45  ;;  %v218_v44 = vpack.c.bf16 %v146_v42, %v146_v42  ;;  %v8376_v45 = vld [vmem:[#allocation5 + $0x1040] sm:$0xff]   ;;  %v8412_v37 = vld [vmem:[#allocation5 + $0x1148] sm:$0xff]   ;;  %v8416_v41 = vld [vmem:[#allocation5 + $0x1150] sm:$0xff]  }
 0x239   :  { %7635 = vmatprep.subr.bf16.mxu1 %v8341_v46  ;;  %v8377_v46 = vld [vmem:[#allocation5 + $0x10c0] sm:$0xff]   ;;  %v8413_v38 = vld [vmem:[#allocation5 + $0x11c8] sm:$0xff]   ;;  %v8417_v42 = vld [vmem:[#allocation5 + $0x11d0] sm:$0xff]  }
 0x23b   :  { %7614 = vmatpush3.bf16.msra.mxu0 %v8342_v47  ;;  %v8378_v47 = vld [vmem:[#allocation5 + $0x1000] sm:$0xff]  }
 0x23c   :  { %7636 = vmatpush3.bf16.msra.mxu1 %v8343_v48  ;;  %7643 = vmatprep.subr.bf16.mxu0 %v8344_v57  ;;  %v8379_v48 = vld [vmem:[#allocation5 + $0x1080] sm:$0xff]   ;;  %v8388_v57 = vld [vmem:[#allocation5 + $0x1058] sm:$0xff]  }
 0x23d   :  { %7665 = vmatprep.subr.bf16.mxu1 %v8345_v58  ;;  %v8389_v58 = vld [vmem:[#allocation5 + $0x10d8] sm:$0xff]  }
 0x23e   :  { %5996 = vmatmul.mubr.bf16.vlgmr.msra.gmra.mrb[56].mxu0 %v212_v54  ;;  %v8385_v54 = vld [vmem:[#allocation5 + $0x10d0] sm:$0xff]  }
 0x23f   :  { %6036 = vmatmul.mubr.bf16.vlgmr.msra.gmra.mrb[56].mxu1 %v214_v56  ;;  %7644 = vmatpush3.bf16.msra.mxu0 %v8346_v59  ;;  %v8387_v56 = vld [vmem:[#allocation5 + $0x1090] sm:$0xff]  }
 0x240   :  { %7666 = vmatpush3.bf16.msra.mxu1 %v8347_v60  ;;  %7645 = vmatprep.subr.bf16.mxu0 %v8348_v61  ;;  %v8390_v60 = vld [vmem:[#allocation5 + $0x1018] sm:$0xff]  }
 0x241   :  { %7667 = vmatprep.subr.bf16.mxu1 %v8349_v62  ;;  %6075 = vmatprep.mubr.bf16.mxu0 %v217_v39  ;;  %v8391_v62 = vld [vmem:[#allocation5 + $0x1098] sm:$0xff]   ;;  %v8414_v39 = vld [vmem:[#allocation5 + $0x1108] sm:$0xff]  }
 0x242   :  { %6115 = vmatprep.mubr.bf16.mxu1 %v219_v40  ;;  %v8415_v40 = vld [vmem:[#allocation5 + $0x1188] sm:$0xff]  }
 0x243   :  { %7646 = vmatpush3.bf16.msra.mxu0 %v8350_v63 }
 0x244   :  { %7668 = vmatpush3.bf16.msra.mxu1 %v8351_v0  ;;  %7647 = vmatprep.subr.bf16.mxu0 %v8352_v1  ;;  %v8392_v0 = vld [vmem:[#allocation5 + $0x1060] sm:$0xff]  }
 0x245   :  { %7669 = vmatprep.subr.bf16.mxu1 %v8353_v2 }
 0x247   :  { %7648 = vmatpush3.bf16.msra.mxu0 %v8354_v3  ;;  %v8393_v3 = vld [vmem:[#allocation5 + $0x10e0] sm:$0xff]  }
 0x248   :  { %7670 = vmatpush3.bf16.msra.mxu1 %v8355_v4  ;;  %7649 = vmatprep.subr.bf16.mxu0 %v8356_v5 }
 0x249   :  { %7671 = vmatprep.subr.bf16.mxu1 %v8357_v6  ;;  %v8394_v6 = vld [vmem:[#allocation5 + $0x1020] sm:$0xff]  }
 0x24b   :  { %7650 = vmatpush3.bf16.msra.mxu0 %v8358_v8 }
 0x24c   :  { %7672 = vmatpush3.bf16.msra.mxu1 %v8359_v10  ;;  %7651 = vmatprep.subr.bf16.mxu0 %v8360_v12  ;;  %v8396_v12 = vld [vmem:[#allocation5 + $0x1068] sm:$0xff]  }
 0x24d   :  { %7673 = vmatprep.subr.bf16.mxu1 %v8361_v15  ;;  %v8398_v15 = vld [vmem:[#allocation5 + $0x1028] sm:$0xff]  }
 0x24f   :  { %7652 = vmatpush3.bf16.msra.mxu0 %v8362_v18  ;;  %v8401_v18 = vld [vmem:[#allocation5 + $0x10f0] sm:$0xff]  }
 0x250   :  { %7674 = vmatpush3.bf16.msra.mxu1 %v8363_v21  ;;  %7653 = vmatprep.subr.bf16.mxu0 %v8364_v24  ;;  %v8404_v21 = vld [vmem:[#allocation5 + $0x1078] sm:$0xff]  }
 0x251   :  { %v7351_v7 = vpop.f32.mrb[32].mxu0  ;;  %7675 = vmatprep.subr.bf16.mxu1 %v8365_v26  ;;  %v8407_v24 = vld [vmem:[#allocation5 + $0x10b8] sm:$0xff]  }
 0x252   :  { %v7373_v9 = vpop.f32.mrb[32].mxu1  ;;  %v7352_v11 = vpop.f32.mrb[33].mxu0 }
 0x253   :  { %v7353_v13 = vadd.f32 %v7352_v11, %v7351_v7  ;;  %v7374_v14 = vpop.f32.mrb[33].mxu1  ;;  %v7354_v17 = vpop.f32.mrb[34].mxu0  ;;  %7654 = vmatpush3.bf16.msra.mxu0 %v8366_v27  ;;  %v151_v27 = vld [vmem:[#allocation2 + $0x218] sm:$0xff] }
 0x254   :  { %v7375_v16 = vadd.f32 %v7374_v14, %v7373_v9  ;;  %v7376_v20 = vpop.f32.mrb[34].mxu1  ;;  %v7355_v22 = vpop.f32.mrb[35].mxu0  ;;  %7676 = vmatpush3.bf16.msra.mxu1 %v8367_v28  ;;  %7655 = vmatprep.subr.bf16.mxu0 %v8368_v29  ;;  %v8395_v9 = vld [vmem:[#allocation5 + $0x10a0] sm:$0xff]   ;;  %v8397_v14 = vld [vmem:[#allocation5 + $0x10e8] sm:$0xff]   ;;  %v8400_v17 = vld [vmem:[#allocation5 + $0x1070] sm:$0xff]  }
 0x255   :  { %v5518_v19 = vadd.f32 %v7353_v13, %v8708_v35  ;;  %v7377_v25 = vpop.f32.mrb[35].mxu1  ;;  %7677 = vmatprep.subr.bf16.mxu1 %v8369_v30  ;;  %v8374_v35 = vld [vmem:[#allocation5 + $0xf38] sm:$0xff]   ;;  %v8403_v20 = vld [vmem:[#allocation5 + $0x10b0] sm:$0xff]   ;;  %v148_v28 = vld [vmem:[#allocation2 + $0x200] sm:$0xff]  ;;  %v223_v30 = vpack.c.bf16 %v151_v27, %v151_v27 }
 0x256   :  { %v8405_v22 = vld [vmem:[#allocation5 + $0x10f8] sm:$0xff]   ;;  %v149_v25 = vld [vmem:[#allocation2 + $0x208] sm:$0xff]  ;;  %v150_v29 = vld [vmem:[#allocation2 + $0x210] sm:$0xff] }
 0x257   :  { %v8711_v23 = vadd.f32 %v7375_v16, %v5518_v19  ;;  %7656 = vmatpush3.bf16.msra.mxu0 %v8370_v31  ;;  %v8399_v16 = vld [vmem:[#allocation5 + $0x10a8] sm:$0xff]   ;;  %v8402_v19 = vld [vmem:[#allocation5 + $0x1030] sm:$0xff]   ;;  %v221_v26 = vpack.c.bf16 %v149_v25, %v149_v25  ;;  %v220_v31 = vpack.c.bf16 %v148_v28, %v148_v28 }
 0x258   :  { %7678 = vmatpush3.bf16.msra.mxu1 %v8371_v32  ;;  %7657 = vmatprep.subr.bf16.mxu0 %v8372_v33  ;;  %v222_v32 = vpack.c.bf16 %v150_v29, %v150_v29  ;;  %v8408_v33 = vld [vmem:[#allocation5 + $0x1140] sm:$0xff]  }
 0x259   :  { %7679 = vmatprep.subr.bf16.mxu1 %v8373_v34  ;;  %v8409_v34 = vld [vmem:[#allocation5 + $0x11c0] sm:$0xff]  }
 0x25b   :  { %7658 = vmatpush3.bf16.msra.mxu0 %v8374_v35  ;;  %v8410_v35 = vld [vmem:[#allocation5 + $0x1100] sm:$0xff]  }
 0x25c   :  { %7680 = vmatpush3.bf16.msra.mxu1 %v8375_v36  ;;  %7687 = vmatprep.subr.bf16.mxu0 %v8376_v45  ;;  %v8411_v36 = vld [vmem:[#allocation5 + $0x1180] sm:$0xff]   ;;  %v8420_v45 = vld [vmem:[#allocation5 + $0x1158] sm:$0xff]  }
 0x25d   :  { %7709 = vmatprep.subr.bf16.mxu1 %v8377_v46  ;;  %v8421_v46 = vld [vmem:[#allocation5 + $0x11d8] sm:$0xff]  }
 0x25e   :  { %6076 = vmatmul.mubr.bf16.vlgmr.msra.gmra.mrb[60].mxu0 %v216_v43  ;;  %v8418_v43 = vld [vmem:[#allocation5 + $0x1110] sm:$0xff]  }
 0x25f   :  { %6116 = vmatmul.mubr.bf16.vlgmr.msra.gmra.mrb[60].mxu1 %v218_v44  ;;  %7688 = vmatpush3.bf16.msra.mxu0 %v8378_v47  ;;  %v8419_v44 = vld [vmem:[#allocation5 + $0x1190] sm:$0xff]  }
 0x260   :  { %7710 = vmatpush3.bf16.msra.mxu1 %v8379_v48  ;;  %7689 = vmatprep.subr.bf16.mxu0 %v8380_v49  ;;  %v8422_v48 = vld [vmem:[#allocation5 + $0x1118] sm:$0xff]  }
 0x261   :  { %7711 = vmatprep.subr.bf16.mxu1 %v8381_v50  ;;  %6155 = vmatprep.mubr.bf16.mxu0 %v221_v26  ;;  %v8423_v50 = vld [vmem:[#allocation5 + $0x1198] sm:$0xff]  }
 0x262   :  { %6195 = vmatprep.mubr.bf16.mxu1 %v223_v30 }
 0x263   :  { %7690 = vmatpush3.bf16.msra.mxu0 %v8382_v51 }
 0x264   :  { %7712 = vmatpush3.bf16.msra.mxu1 %v8383_v52  ;;  %7691 = vmatprep.subr.bf16.mxu0 %v8384_v53  ;;  %v8424_v52 = vld [vmem:[#allocation5 + $0x1160] sm:$0xff]  }
 0x265   :  { %7713 = vmatprep.subr.bf16.mxu1 %v8385_v54 }
 0x267   :  { %7692 = vmatpush3.bf16.msra.mxu0 %v8386_v55  ;;  %v8425_v55 = vld [vmem:[#allocation5 + $0x11e0] sm:$0xff]  }
 0x268   :  { %7714 = vmatpush3.bf16.msra.mxu1 %v8387_v56  ;;  %7693 = vmatprep.subr.bf16.mxu0 %v8388_v57 }
 0x269   :  { %7715 = vmatprep.subr.bf16.mxu1 %v8389_v58  ;;  %v8426_v58 = vld [vmem:[#allocation5 + $0x1120] sm:$0xff]  }
 0x26b   :  { %7694 = vmatpush3.bf16.msra.mxu0 %v8390_v60 }
 0x26c   :  { %7716 = vmatpush3.bf16.msra.mxu1 %v8391_v62  ;;  %7695 = vmatprep.subr.bf16.mxu0 %v8392_v0  ;;  %v8428_v0 = vld [vmem:[#allocation5 + $0x1168] sm:$0xff]  }
 0x26d   :  { %7717 = vmatprep.subr.bf16.mxu1 %v8393_v3  ;;  %v8430_v3 = vld [vmem:[#allocation5 + $0x1128] sm:$0xff]  }
 0x26f   :  { %7696 = vmatpush3.bf16.msra.mxu0 %v8394_v6  ;;  %v8433_v6 = vld [vmem:[#allocation5 + $0x11f0] sm:$0xff]  }
 0x270   :  { %7718 = vmatpush3.bf16.msra.mxu1 %v8395_v9  ;;  %7697 = vmatprep.subr.bf16.mxu0 %v8396_v12  ;;  %v8436_v9 = vld [vmem:[#allocation5 + $0x1178] sm:$0xff]  }
 0x271   :  { %v7395_v59 = vpop.f32.mrb[36].mxu0  ;;  %7719 = vmatprep.subr.bf16.mxu1 %v8397_v14  ;;  %v8439_v12 = vld [vmem:[#allocation5 + $0x11b8] sm:$0xff]  }
 0x272   :  { %v7417_v61 = vpop.f32.mrb[36].mxu1  ;;  %v7396_v63 = vpop.f32.mrb[37].mxu0  ;;  %v155_v14 = vld [vmem:[#allocation2 + $0x238] sm:$0xff] }
 0x273   :  { %v7397_v1 = vadd.f32 %v7396_v63, %v7395_v59  ;;  %v7418_v2 = vpop.f32.mrb[37].mxu1  ;;  %v7398_v5 = vpop.f32.mrb[38].mxu0  ;;  %7698 = vmatpush3.bf16.msra.mxu0 %v8398_v15  ;;  %v152_v15 = vld [vmem:[#allocation2 + $0x220] sm:$0xff] }
 0x274   :  { %v7419_v4 = vadd.f32 %v7418_v2, %v7417_v61  ;;  %v7420_v8 = vpop.f32.mrb[38].mxu1  ;;  %v7399_v10 = vpop.f32.mrb[39].mxu0  ;;  %7720 = vmatpush3.bf16.msra.mxu1 %v8399_v16  ;;  %7699 = vmatprep.subr.bf16.mxu0 %v8400_v17  ;;  %v8427_v61 = vld [vmem:[#allocation5 + $0x11a0] sm:$0xff]   ;;  %v8429_v2 = vld [vmem:[#allocation5 + $0x11e8] sm:$0xff]   ;;  %v8432_v5 = vld [vmem:[#allocation5 + $0x1170] sm:$0xff]   ;;  %v227_v17 = vpack.c.bf16 %v155_v14, %v155_v14 }
 0x275   :  { %v5598_v7 = vadd.f32 %v7397_v1, %v8711_v23  ;;  %v7421_v13 = vpop.f32.mrb[39].mxu1  ;;  %7721 = vmatprep.subr.bf16.mxu1 %v8401_v18  ;;  %v8406_v23 = vld [vmem:[#allocation5 + $0x1038] sm:$0xff]   ;;  %v8435_v8 = vld [vmem:[#allocation5 + $0x11b0] sm:$0xff]   ;;  %v224_v18 = vpack.c.bf16 %v152_v15, %v152_v15 }
 0x276   :  { %v8437_v10 = vld [vmem:[#allocation5 + $0x11f8] sm:$0xff]   ;;  %v153_v13 = vld [vmem:[#allocation2 + $0x228] sm:$0xff] }
 0x277   :  { %v8714_v11 = vadd.f32 %v7419_v4, %v5598_v7  ;;  %7700 = vmatpush3.bf16.msra.mxu0 %v8402_v19  ;;  %v8431_v4 = vld [vmem:[#allocation5 + $0x11a8] sm:$0xff]   ;;  %v8434_v7 = vld [vmem:[#allocation5 + $0x1130] sm:$0xff]   ;;  %v225_v16 = vpack.c.bf16 %v153_v13, %v153_v13 }
 0x278   :  { %7722 = vmatpush3.bf16.msra.mxu1 %v8403_v20  ;;  %7701 = vmatprep.subr.bf16.mxu0 %v8404_v21  ;;  %v154_v19 = vld [vmem:[#allocation2 + $0x230] sm:$0xff] }
 0x279   :  { %7723 = vmatprep.subr.bf16.mxu1 %v8405_v22  ;;  %v226_v20 = vpack.c.bf16 %v154_v19, %v154_v19  ;;  %v6297_v13 = vld [vmem:[#allocation8 + $0x68] sm:$0xff]  ;;  %v6298_v15 = vld [vmem:[#allocation8 + $0x70] sm:$0xff] }
 0x27b   :  { %7702 = vmatpush3.bf16.msra.mxu0 %v8406_v23 }
 0x27c   :  { %7724 = vmatpush3.bf16.msra.mxu1 %v8407_v24  ;;  %7731 = vmatprep.subr.bf16.mxu0 %v8408_v33 }
 0x27d   :  { %7753 = vmatprep.subr.bf16.mxu1 %v8409_v34 }
 0x27e   :  { %6156 = vmatmul.mubr.bf16.vlgmr.msra.gmra.mrb[64].mxu0 %v220_v31 }
 0x27f   :  { %6196 = vmatmul.mubr.bf16.vlgmr.msra.gmra.mrb[64].mxu1 %v222_v32  ;;  %7732 = vmatpush3.bf16.msra.mxu0 %v8410_v35 }
 0x280   :  { %7754 = vmatpush3.bf16.msra.mxu1 %v8411_v36  ;;  %7733 = vmatprep.subr.bf16.mxu0 %v8412_v37 }
 0x281   :  { %7755 = vmatprep.subr.bf16.mxu1 %v8413_v38  ;;  %6235 = vmatprep.mubr.bf16.mxu0 %v225_v16  ;;  %v6299_v16 = vld [vmem:[#allocation8 + $0x78] sm:$0xff] }
 0x282   :  { %6275 = vmatprep.mubr.bf16.mxu1 %v227_v17  ;;  %v7849_v17 = vpack.c.bf16 %v6299_v16, %v6298_v15 }
 0x283   :  { %7734 = vmatpush3.bf16.msra.mxu0 %v8414_v39 }
 0x284   :  { %7756 = vmatpush3.bf16.msra.mxu1 %v8415_v40  ;;  %7735 = vmatprep.subr.bf16.mxu0 %v8416_v41 }
 0x285   :  { %7757 = vmatprep.subr.bf16.mxu1 %v8417_v42 }
 0x287   :  { %7736 = vmatpush3.bf16.msra.mxu0 %v8418_v43 }
 0x288   :  { %7758 = vmatpush3.bf16.msra.mxu1 %v8419_v44  ;;  %7737 = vmatprep.subr.bf16.mxu0 %v8420_v45  ;;  %v6284_v45 = vld [vmem:[#allocation8] sm:$0xff] }
 0x289   :  { %7759 = vmatprep.subr.bf16.mxu1 %v8421_v46  ;;  %v6285_v46 = vld [vmem:[#allocation8 + $0x8] sm:$0xff] }
 0x28b   :  { %7738 = vmatpush3.bf16.msra.mxu0 %v8422_v48  ;;  %v8593_v48 = vmov 0.0|0.0  }
 0x28c   :  { %7760 = vmatpush3.bf16.msra.mxu1 %v8423_v50  ;;  %7739 = vmatprep.subr.bf16.mxu0 %v8424_v52  ;;  %v6287_v50 = vld [vmem:[#allocation8 + $0x18] sm:$0xff]  ;;  %v6288_v52 = vld [vmem:[#allocation8 + $0x20] sm:$0xff] }
 0x28d   :  { %7761 = vmatprep.subr.bf16.mxu1 %v8425_v55  ;;  %v6290_v55 = vld [vmem:[#allocation8 + $0x30] sm:$0xff] }
 0x28f   :  { %7740 = vmatpush3.bf16.msra.mxu0 %v8426_v58  ;;  %v6292_v58 = vld [vmem:[#allocation8 + $0x40] sm:$0xff] }
 0x290   :  { %7762 = vmatpush3.bf16.msra.mxu1 %v8427_v61  ;;  %7741 = vmatprep.subr.bf16.mxu0 %v8428_v0  ;;  %v6294_v61 = vld [vmem:[#allocation8 + $0x50] sm:$0xff] }
 0x291   :  { %v7439_v47 = vpop.f32.mrb[40].mxu0  ;;  %7763 = vmatprep.subr.bf16.mxu1 %v8429_v2 }
 0x292   :  { %v7461_v49 = vpop.f32.mrb[40].mxu1  ;;  %v7440_v51 = vpop.f32.mrb[41].mxu0 }
 0x293   :  { %v7441_v53 = vadd.f32 %v7440_v51, %v7439_v47  ;;  %v7462_v54 = vpop.f32.mrb[41].mxu1  ;;  %v7442_v57 = vpop.f32.mrb[42].mxu0  ;;  %7742 = vmatpush3.bf16.msra.mxu0 %v8430_v3  ;;  %v6286_v47 = vld [vmem:[#allocation8 + $0x10] sm:$0xff] }
 0x294   :  { %v7463_v56 = vadd.f32 %v7462_v54, %v7461_v49  ;;  %v7464_v60 = vpop.f32.mrb[42].mxu1  ;;  %v7443_v62 = vpop.f32.mrb[43].mxu0  ;;  %7764 = vmatpush3.bf16.msra.mxu1 %v8431_v4  ;;  %7743 = vmatprep.subr.bf16.mxu0 %v8432_v5  ;;  %v7828_v49 = vpack.c.bf16 %v6285_v46, %v6284_v45  ;;  %v7831_v51 = vpack.c.bf16 %v6287_v50, %v6286_v47 }
 0x295   :  { %v5678_v59 = vadd.f32 %v7441_v53, %v8714_v11  ;;  %v7465_v1 = vpop.f32.mrb[43].mxu1  ;;  %7765 = vmatprep.subr.bf16.mxu1 %v8433_v6  ;;  %v8438_v11 = vld [vmem:[#allocation5 + $0x1138] sm:$0xff]   ;;  %v6289_v53 = vld [vmem:[#allocation8 + $0x28] sm:$0xff] }
 0x296   :  { %v7834_v54 = vpack.c.bf16 %v6289_v53, %v6288_v52  ;;  %v6295_v62 = vld [vmem:[#allocation8 + $0x58] sm:$0xff] }
 0x297   :  { %v5718_v63 = vadd.f32 %v7463_v56, %v5678_v59  ;;  %7744 = vmatpush3.bf16.msra.mxu0 %v8434_v7  ;;  %v6291_v56 = vld [vmem:[#allocation8 + $0x38] sm:$0xff]  ;;  %v6293_v59 = vld [vmem:[#allocation8 + $0x48] sm:$0xff] }
 0x298   :  { %7766 = vmatpush3.bf16.msra.mxu1 %v8435_v8  ;;  %7745 = vmatprep.subr.bf16.mxu0 %v8436_v9  ;;  %v7837_v57 = vpack.c.bf16 %v6291_v56, %v6290_v55  ;;  %v7840_v60 = vpack.c.bf16 %v6293_v59, %v6292_v58 }
 0x299   :  { %7767 = vmatprep.subr.bf16.mxu1 %v8437_v10 }
 0x29b   :  { %7746 = vmatpush3.bf16.msra.mxu0 %v8438_v11 }
 0x29c   :  { %7768 = vmatpush3.bf16.msra.mxu1 %v8439_v12  ;;  %7827 = vmatprep.subr.bf16.mxu0 %v8593_v48  ;;  %v6296_v12 = vld [vmem:[#allocation8 + $0x60] sm:$0xff] }
 0x29d   :  { %v7846_v14 = vpack.c.bf16 %v6297_v13, %v6296_v12 }
 0x29e   :  { %6236 = vmatmul.mubr.bf16.vlgmr.msra.gmra.mrb[68].mxu0 %v224_v18  ;;  %v8595_v18 = vmov 0.0  }
 0x29f   :  { %6276 = vmatmul.mubr.bf16.vlgmr.msra.gmra.mrb[68].mxu1 %v226_v20  ;;  %7829 = vmatpush3.bf16.msra.mxu0 %v7828_v49 }
 0x2a0   :  { %7830 = vmatprep.subr.bf16.mxu0 %v8593_v48  ;;  %7824 = vmatprep.mubr.msk.f32.mxu0 %vm8594_vm0, %v8595_v18 }
 0x2a3   :  { %7832 = vmatpush3.bf16.msra.mxu0 %v7831_v51 }
 0x2a4   :  { %7833 = vmatprep.subr.bf16.mxu0 %v8593_v48 }
 0x2a7   :  { %7835 = vmatpush3.bf16.msra.mxu0 %v7834_v54 }
 0x2a8   :  { %7836 = vmatprep.subr.bf16.mxu0 %v8593_v48 }
 0x2ab   :  { %7838 = vmatpush3.bf16.msra.mxu0 %v7837_v57 }
 0x2ac   :  { %7839 = vmatprep.subr.bf16.mxu0 %v8593_v48 }
 0x2af   :  { %7841 = vmatpush3.bf16.msra.mxu0 %v7840_v60 }
 0x2b0   :  { %7842 = vmatprep.subr.bf16.mxu0 %v8593_v48 }
 0x2b1   :  { %v7483_v21 = vpop.f32.mrb[44].mxu0 }
 0x2b2   :  { %v7505_v22 = vpop.f32.mrb[44].mxu1  ;;  %v7484_v23 = vpop.f32.mrb[45].mxu0 }
 0x2b3   :  { %v7506_v24 = vpop.f32.mrb[45].mxu1  ;;  %v7485_v25 = vadd.f32 %v7484_v23, %v7483_v21  ;;  %v7486_v27 = vpop.f32.mrb[46].mxu0 }
 0x2b4   :  { %v7507_v26 = vadd.f32 %v7506_v24, %v7505_v22  ;;  %v7508_v28 = vpop.f32.mrb[46].mxu1  ;;  %v7487_v29 = vpop.f32.mrb[47].mxu0 }
 0x2b5   :  { %v7509_v30 = vpop.f32.mrb[47].mxu1  ;;  %v5758_v31 = vadd.f32 %v7485_v25, %v5718_v63  ;;  %v7843_v63 = vpack.c.bf16 %v6295_v62, %v6294_v61 }
 0x2b7   :  { %v5798_v32 = vadd.f32 %v7507_v26, %v5758_v31  ;;  %7844 = vmatpush3.bf16.msra.mxu0 %v7843_v63 }
 0x2b8   :  { %7845 = vmatprep.subr.bf16.mxu0 %v8593_v48 }
 0x2bb   :  { %7847 = vmatpush3.bf16.msra.mxu0 %v7846_v14 }
 0x2bc   :  { %7848 = vmatprep.subr.bf16.mxu0 %v8593_v48 }
 0x2bf   :  { %7850 = vmatpush3.bf16.msra.mxu0 %v7849_v17 }
 0x2d1   :  { %v7527_v33 = vpop.f32.mrb[48].mxu0 }
 0x2d2   :  { %v7549_v34 = vpop.f32.mrb[48].mxu1  ;;  %v7528_v35 = vpop.f32.mrb[49].mxu0 }
 0x2d3   :  { %v7529_v36 = vadd.f32 %v7528_v35, %v7527_v33  ;;  %v7550_v37 = vpop.f32.mrb[49].mxu1  ;;  %v7530_v38 = vpop.f32.mrb[50].mxu0 }
 0x2d4   :  { %v7551_v39 = vadd.f32 %v7550_v37, %v7549_v34  ;;  %v7552_v40 = vpop.f32.mrb[50].mxu1  ;;  %v7531_v41 = vpop.f32.mrb[51].mxu0 }
 0x2d5   :  { %v5838_v42 = vadd.f32 %v7529_v36, %v5798_v32  ;;  %v7553_v43 = vpop.f32.mrb[51].mxu1 }
 0x2d7   :  { %v5878_v44 = vadd.f32 %v7551_v39, %v5838_v42 }
 0x2f1   :  { %v7571_v0 = vpop.f32.mrb[52].mxu0 }
 0x2f2   :  { %v7593_v1 = vpop.f32.mrb[52].mxu1  ;;  %v7572_v2 = vpop.f32.mrb[53].mxu0 }
 0x2f3   :  { %v7573_v3 = vadd.f32 %v7572_v2, %v7571_v0  ;;  %v7594_v4 = vpop.f32.mrb[53].mxu1  ;;  %v7574_v5 = vpop.f32.mrb[54].mxu0 }
 0x2f4   :  { %v7595_v6 = vadd.f32 %v7594_v4, %v7593_v1  ;;  %v7596_v7 = vpop.f32.mrb[54].mxu1  ;;  %v7575_v8 = vpop.f32.mrb[55].mxu0  ;;  %v6982_v4 = vld [vmem:[#allocation10] ss:$0 sm:$0xff] }
 0x2f5   :  { %v5918_v9 = vadd.f32 %v7573_v3, %v5878_v44  ;;  %v7597_v10 = vpop.f32.mrb[55].mxu1 }
 0x2f7   :  { %v5958_v11 = vadd.f32 %v7595_v6, %v5918_v9 }
 0x311   :  { %v7615_v19 = vpop.f32.mrb[56].mxu0 }
 0x312   :  { %v7637_v20 = vpop.f32.mrb[56].mxu1  ;;  %v7616_v21 = vpop.f32.mrb[57].mxu0 }
 0x313   :  { %v7638_v22 = vpop.f32.mrb[57].mxu1  ;;  %v7617_v23 = vadd.f32 %v7616_v21, %v7615_v19  ;;  %v7618_v25 = vpop.f32.mrb[58].mxu0 }
 0x314   :  { %v7639_v24 = vadd.f32 %v7638_v22, %v7637_v20  ;;  %v7640_v26 = vpop.f32.mrb[58].mxu1  ;;  %v7619_v27 = vpop.f32.mrb[59].mxu0 }
 0x315   :  { %v7641_v28 = vpop.f32.mrb[59].mxu1  ;;  %v5998_v29 = vadd.f32 %v7617_v23, %v5958_v11 }
 0x317   :  { %v6038_v30 = vadd.f32 %v7639_v24, %v5998_v29 }
 0x331   :  { %v7659_v31 = vpop.f32.mrb[60].mxu0 }
 0x332   :  { %v7681_v32 = vpop.f32.mrb[60].mxu1  ;;  %v7660_v33 = vpop.f32.mrb[61].mxu0 }
 0x333   :  { %v7661_v34 = vadd.f32 %v7660_v33, %v7659_v31  ;;  %v7682_v35 = vpop.f32.mrb[61].mxu1  ;;  %v7662_v36 = vpop.f32.mrb[62].mxu0 }
 0x334   :  { %v7683_v37 = vadd.f32 %v7682_v35, %v7681_v32  ;;  %v7684_v38 = vpop.f32.mrb[62].mxu1  ;;  %v7663_v39 = vpop.f32.mrb[63].mxu0 }
 0x335   :  { %v6078_v40 = vadd.f32 %v7661_v34, %v6038_v30  ;;  %v7685_v41 = vpop.f32.mrb[63].mxu1 }
 0x337   :  { %v6118_v42 = vadd.f32 %v7683_v37, %v6078_v40 }
 0x351   :  { %v7703_v43 = vpop.f32.mrb[64].mxu0 }
 0x352   :  { %v7725_v44 = vpop.f32.mrb[64].mxu1  ;;  %v7704_v45 = vpop.f32.mrb[65].mxu0 }
 0x353   :  { %v7705_v46 = vadd.f32 %v7704_v45, %v7703_v43  ;;  %v7726_v47 = vpop.f32.mrb[65].mxu1  ;;  %v7706_v48 = vpop.f32.mrb[66].mxu0 }
 0x354   :  { %v7727_v49 = vadd.f32 %v7726_v47, %v7725_v44  ;;  %v7728_v50 = vpop.f32.mrb[66].mxu1  ;;  %v7707_v51 = vpop.f32.mrb[67].mxu0 }
 0x355   :  { %v6158_v52 = vadd.f32 %v7705_v46, %v6118_v42  ;;  %v7729_v53 = vpop.f32.mrb[67].mxu1 }
 0x357   :  { %v6198_v54 = vadd.f32 %v7727_v49, %v6158_v52 }
 0x371   :  { %v7747_v55 = vpop.f32.mrb[68].mxu0 }
 0x372   :  { %v7769_v56 = vpop.f32.mrb[68].mxu1  ;;  %v7748_v57 = vpop.f32.mrb[69].mxu0 }
 0x373   :  { %v7770_v58 = vpop.f32.mrb[69].mxu1  ;;  %v7749_v59 = vadd.f32 %v7748_v57, %v7747_v55  ;;  %v7750_v61 = vpop.f32.mrb[70].mxu0 }
 0x374   :  { %v7771_v60 = vadd.f32 %v7770_v58, %v7769_v56  ;;  %v7772_v62 = vpop.f32.mrb[70].mxu1  ;;  %v7751_v63 = vpop.f32.mrb[71].mxu0 }
 0x375   :  { %v7773_v0 = vpop.f32.mrb[71].mxu1  ;;  %v6238_v1 = vadd.f32 %v7749_v59, %v6198_v54 }
 0x377   :  { %v6278_v2 = vadd.f32 %v7771_v60, %v6238_v1 }
 0x379   :  { %v6283_v3 = vmax.f32 %v6278_v2, 0.0 }
 0x37b   :  { %7825 = vmatmul.mubr.f32.vlgmr.msra.gmra.mrb[72].mxu0 %v6283_v3 }
 0x44e   :  { %v6373_v5 = vpop.f32.mrb[72].mxu0 }
 0x44f   :  { %v6374_v6 = vadd.f32 %v6982_v4, %v6373_v5  ;;  %v7826_v7 = vpop.f32.mrb[73].mxu0 }
 0x451   :  { %6377 = vmax.xlane.f32.xlu0 %v6374_v6 }
 0x4de   :  { %v6378_v8 = vpop.xlane.xlu0 %6377 }
 0x4df   :  { %v6379_v9 = vsub.f32 %v6374_v6, %v6378_v8 }
 0x4e1   :  { %v6380_v10 = vmul.f32 1.442695, %v6379_v9 }
 0x4e3   :  { %8440 = vpow2.f32 %v6380_v10 }
 0x4ed   :  { %v8441_v11 = vpop.eup %8440 }
 0x4ee   :  { %6382 = vadd.xlane.f32.xlu0 %v8441_v11 }
 0x57b   :  { %v6383_v12 = vpop.xlane.xlu0 %6382 }
 0x57c   :  { %8442 = vlog2.f32 %v6383_v12 }
 0x586   :  { %v8443_v13 = vpop.eup %8442 }
 0x587   :  { %v6385_v14 = vmul.f32 0.6931472, %v8443_v13 }
 0x589   :  { %v6386_v15 = vsub.f32 %v6379_v9, %v6385_v14 }
 0x58b   :  { %6387 = vst [vmem:[#allocation11] sm:$0xff] %v6386_v15 }
 0x58c   :  { %8565 = shalt.err (!%p8562_p2)
}
 0x58d   :  { %s8566_s7 = scalar_lea.hbm %s8734_s5, 128 }
 0x58e   :  { %p8567_p3 = scmp.ne.s32.totalorder %s8734_s5, %s8566_s7  ;;  %p8570_p4 = scmp.lt.u32.totalorder %s8566_s7, %s8734_s5 }
 0x590   :  { %p8572_p5 = pnand %p8570_p4, %p8567_p3 }
 0x592   :  { %8575 = shalt.err (!%p8572_p5)
}
 0x593   :  { %6397 = dma.vmem_to_hbm [thread:$0]  %s6395_s29, 128, %s8734_s5, [#allocation4]  }
 0x594   :  { %8582 = dma.done.wait [#allocation4], 128  }
 0x595   :  { %8583 = vsyncadd [#allocation4], 4294967168 }
 0x596   :  { %6401 = vsyncpa [#allocation3], 1 }
 0x597   :  { %6402 = vsyncpa [#allocation6], 1 }
 0x598   :  { %6403 = vsyncpa [#allocation9], 1 }
 0x599   :  { %6404 = vsyncpa [#allocation4], 1 }

</bundles_post_ra>
